<compile_context>
chip_gen: v6e
topology: v6e:2x2x1
jax: 0.10.0
libtpu: 0.0.40
codegen_flags: <defaults>
</compile_context>

<pallas_src>
import jax
import jax.numpy as jnp
from jax import lax
from jax.experimental import pallas as pl
from jax.experimental.pallas import tpu as pltpu

# --- small, module-consistent sizes ---------------------------------------
B = 2                       # batch
HIST = 8                    # history_length
NUM_TYPE = 10               # num_type
C = 6 * NUM_TYPE            # conv channels = 60
INPUT_DIMS = HIST * C       # 480  (T_input_dim = input_dims / history_length = 60)
N_GROUPS = INPUT_DIMS // NUM_TYPE   # 48 LayerNorm groups per flat row
NUM_ACTIONS = 4
HIDDEN = (256, 256)         # QNetwork default hidden_units
K = 3                       # assumed Conv1d kernel size (padding=1)
EPS = 1e-6                  # LayerNorm eps (explicit in the module spec)


# --- the single fused kernel -------------------------------------------------
def _fused_kernel(x_ref, a_ref, p_ref, pt_ref, w1x_ref, w1a_ref, b1_ref,
                  w2a_ref, b2a_ref, w2b_ref, b2b_ref, w3a_ref, w3b_ref, b3_ref,
                  o_ref):
    f32 = jnp.float32
    bf16 = jnp.bfloat16

    x = x_ref[...]                                   # [bm, 480] f32
    P = p_ref[...]                                   # [480, 48] bf16 (exact 0/1)
    PT = pt_ref[...]                                 # [48, 480] bf16

    # ---- 6x grouped LayerNorm (groups of NUM_TYPE lanes), lane-dense -------
    # group mean/var via indicator-matrix matmuls on the MXU; rsqrt at group
    # granularity, then broadcast back to 480 lanes with one more matmul.
    inv_n = 1.0 / NUM_TYPE
    mean_g = jnp.dot(x.astype(bf16), P, preferred_element_type=f32) * inv_n      # [bm, 48]
    mean = jnp.dot(mean_g.astype(bf16), PT, preferred_element_type=f32)          # [bm, 480]
    d = x - mean
    var_g = jnp.dot((d * d).astype(bf16), P, preferred_element_type=f32) * inv_n  # [bm, 48]
    rs_g = lax.rsqrt(var_g + EPS)
    rs = jnp.dot(rs_g.astype(bf16), PT, preferred_element_type=f32)              # [bm, 480]
    xn = d * rs                                      # gamma/beta folded into w1x/b1

    # ---- LN-affine + Conv1d + NCL permute + flatten + Linear1 (both nets) ---
    # all statically folded into w1x [480,512] / b1 [1,512] on the host.
    h = (jnp.dot(xn.astype(bf16), w1x_ref[...], preferred_element_type=f32)
         + jnp.dot(a_ref[...].astype(bf16), w1a_ref[...], preferred_element_type=f32)
         + b1_ref[...])
    h = jnp.maximum(h, 0.0)                          # [bm, 512]

    # ---- second layer: two dense [256,256] dots (no block-diagonal zeros) ---
    h1 = h[:, :HIDDEN[0]]                            # 256-lane aligned slice (free)
    h2 = h[:, HIDDEN[0]:]
    g1 = jnp.maximum(
        jnp.dot(h1.astype(bf16), w2a_ref[...], preferred_element_type=f32) + b2a_ref[...], 0.0)
    g2 = jnp.maximum(
        jnp.dot(h2.astype(bf16), w2b_ref[...], preferred_element_type=f32) + b2b_ref[...], 0.0)

    # ---- final layer kept f32 (tiny: 2x [256,2]); col 0 = q1, col 1 = q2 ----
    o_ref[...] = (jnp.dot(g1, w3a_ref[...], preferred_element_type=f32)
                  + jnp.dot(g2, w3b_ref[...], preferred_element_type=f32)
                  + b3_ref[...])


# --- forward wrapper ----------------------------------------------------------
def twinned_q_forward(kp, x, action, *, batch_tile=256):
    b = x.shape[0]
    bm = b if (b <= batch_tile or b % batch_tile != 0) else batch_tile
    grid = (b // bm,)

    weights = (kp["P"], kp["PT"], kp["w1x"], kp["w1a"], kp["b1"],
               kp["w2a"], kp["b2a"], kp["w2b"], kp["b2b"],
               kp["w3a"], kp["w3b"], kp["b3"])

    def batch_spec(shape):
        n = len(shape)
        return pl.BlockSpec((bm,) + tuple(shape[1:]),
                            lambda i, _n=n: (i,) + (0,) * (_n - 1))

    def const_spec(shape):
        n = len(shape)
        # constant block index -> weight tile stays VMEM-resident across batch tiles
        return pl.BlockSpec(tuple(shape), lambda i, _n=n: (0,) * _n)

    in_specs = ([batch_spec(x.shape), batch_spec(action.shape)]
                + [const_spec(w.shape) for w in weights])

    out = pl.pallas_call(
        _fused_kernel,
        out_shape=jax.ShapeDtypeStruct((b, 2), jnp.float32),
        grid=grid,
        in_specs=in_specs,
        out_specs=batch_spec((b, 2)),
        compiler_params=pltpu.CompilerParams(dimension_semantics=("parallel",)),
    )(x, action, *weights)
    return out[:, 0:1], out[:, 1:2]                 # (q1, q2), each [B, 1]


# --- deterministic parameter init (torch layout) -----------------------------
def init_params(key):
    ks = jax.random.split(key, 4)

    def lin(k, fan_in, fan_out):
        kw, kb = jax.random.split(k)
        lim = 1.0 / jnp.sqrt(jnp.float32(fan_in))
        w = jax.random.uniform(kw, (fan_in, fan_out), jnp.float32, -lim, lim)
        b = jax.random.uniform(kb, (1, fan_out), jnp.float32, -lim, lim)
        return w, b

    lim = 1.0 / jnp.sqrt(jnp.float32(C * K))
    conv_w = jax.random.uniform(ks[0], (C, C, K), jnp.float32, -lim, lim)  # [Cout,Cin,K]
    conv_b = jax.random.uniform(ks[1], (1, C), jnp.float32, -lim, lim)

    def qnet(k):
        k1, k2, k3 = jax.random.split(k, 3)
        w1, b1 = lin(k1, INPUT_DIMS + NUM_ACTIONS, HIDDEN[0])
        w2, b2 = lin(k2, HIDDEN[0], HIDDEN[1])
        w3, b3 = lin(k3, HIDDEN[1], 1)
        return dict(w1=w1, b1=b1, w2=w2, b2=b2, w3=w3, b3=b3)

    return dict(
        ln_gamma=jnp.ones((6, NUM_TYPE), jnp.float32),   # nn.LayerNorm default affine
        ln_beta=jnp.zeros((6, NUM_TYPE), jnp.float32),
        conv_w=conv_w, conv_b=conv_b,
        q1=qnet(ks[2]), q2=qnet(ks[3]),
    )


# --- one-time host-side weight preprocessing for the fused kernel ------------
def prepare_kernel_params(p):
    f32 = jnp.float32
    bf16 = jnp.bfloat16

    # Group-indicator matrices for the 48 LayerNorm groups (exact 0/1 in bf16).
    idx = jnp.arange(INPUT_DIMS)
    P = (idx[:, None] // NUM_TYPE == jnp.arange(N_GROUPS)[None, :]).astype(f32)   # [480,48]
    PT = P.T                                                                       # [48,480]

    # Conv1d(C, C, 3, pad=1) as a banded [480,480] matrix acting on NLC-flat rows
    # (host-only; folded away below):
    #   y[b, l*C+o] = sum_{k,i} conv_w[o,i,k] * xn[b, (l+k-1)*C + i]
    wc = jnp.zeros((INPUT_DIMS, INPUT_DIMS), f32)
    for l_out in range(HIST):
        for k in range(K):
            l_in = l_out + k - 1
            if 0 <= l_in < HIST:
                wc = wc.at[l_in * C:(l_in + 1) * C,
                           l_out * C:(l_out + 1) * C].set(p["conv_w"][:, :, k].T)
    bc = jnp.tile(p["conv_b"].reshape(-1), HIST).reshape(1, INPUT_DIMS)

    # NLC->NCL permute + flatten folded into a row permutation of w1
    # (kernel feat index l*C+c  <-  torch feat index c*HIST+l), twin nets fused.
    j = jnp.arange(INPUT_DIMS)
    perm = (j % C) * HIST + (j // C)
    q1, q2 = p["q1"], p["q2"]
    w1f = jnp.concatenate([q1["w1"][:INPUT_DIMS][perm],
                           q2["w1"][:INPUT_DIMS][perm]], axis=1)       # [480, 512]
    w1a = jnp.concatenate([q1["w1"][INPUT_DIMS:],
                           q2["w1"][INPUT_DIMS:]], axis=1)             # [4, 512]
    b1 = jnp.concatenate([q1["b1"], q2["b1"]], axis=1)                 # [1, 512]

    # Fold conv into Linear1 (no nonlinearity between them):
    #   h = xn_aff @ (wc @ w1f) + (bc @ w1f) + b1
    w1cf = wc @ w1f                                                    # [480, 512]
    b1f = b1 + bc @ w1f

    # Fold LayerNorm affine (xn_aff = xn_raw * gamma + beta) into w1cf / b1f.
    g480 = jnp.tile(p["ln_gamma"].reshape(-1), HIST).reshape(INPUT_DIMS, 1)
    beta480 = jnp.tile(p["ln_beta"].reshape(-1), HIST).reshape(1, INPUT_DIMS)
    w1x = g480 * w1cf
    b1f = b1f + beta480 @ w1cf

    # Second layer: two dense [256,256] weights (no block-diagonal zeros).
    h2_ = HIDDEN[1]
    # Final layer: per-net [256,2] weights writing disjoint output columns.
    w3a = jnp.concatenate([q1["w3"], jnp.zeros((h2_, 1), f32)], axis=1)   # [256,2]
    w3b = jnp.concatenate([jnp.zeros((h2_, 1), f32), q2["w3"]], axis=1)   # [256,2]
    b3 = jnp.concatenate([q1["b3"], q2["b3"]], axis=1)                    # [1, 2]

    return dict(
        P=P.astype(bf16), PT=PT.astype(bf16),
        w1x=w1x.astype(bf16), w1a=w1a.astype(bf16), b1=b1f,
        w2a=q1["w2"].astype(bf16), b2a=q1["b2"],
        w2b=q2["w2"].astype(bf16), b2b=q2["b2"],
        w3a=w3a, w3b=w3b, b3=b3,
    )


# --- pure-JAX reference in torch layout (for a sanity check) -----------------
def reference_forward(params, x, action):
    b = x.shape[0]
    x4 = x.reshape(b, HIST, 6, NUM_TYPE)
    mu = jnp.mean(x4, axis=-1, keepdims=True)
    var = jnp.mean(jnp.square(x4 - mu), axis=-1, keepdims=True)
    xn4 = (x4 - mu) / jnp.sqrt(var + EPS)
    xn4 = xn4 * params["ln_gamma"][None, None] + params["ln_beta"][None, None]
    xn = xn4.reshape(b, HIST, C)
    x_ncl = jnp.transpose(xn, (0, 2, 1))
    x_ncl_pad = jnp.pad(x_ncl, ((0, 0), (0, 0), (1, 1)))
    y = jnp.zeros((b, C, HIST), jnp.float32)
    for k in range(K):
        y = y + jnp.einsum("oi,bil->bol", params["conv_w"][:, :, k],
                           x_ncl_pad[:, :, k:k + HIST])
    y = y + params["conv_b"].reshape(1, C, 1)
    feat = y.reshape(b, C * HIST)                      # torch.flatten of NCL
    xa = jnp.concatenate([feat, action], axis=1)

    def q(p):
        h = jnp.maximum(xa @ p["w1"] + p["b1"], 0.0)
        h = jnp.maximum(h @ p["w2"] + p["b2"], 0.0)
        return h @ p["w3"] + p["b3"]

    return q(params["q1"]), q(params["q2"])


if __name__ == "__main__":
    key = jax.random.PRNGKey(0)
    kparam, kx, ka = jax.random.split(key, 3)
    params = init_params(kparam)
    kernel_params = prepare_kernel_params(params)   # one-time weight prep (host algebra)

    x = jax.random.normal(kx, (B, INPUT_DIMS), jnp.float32)
    action = jax.random.normal(ka, (B, NUM_ACTIONS), jnp.float32)

    fwd = jax.jit(twinned_q_forward)
    q1, q2 = fwd(kernel_params, x, action)
    jax.block_until_ready((q1, q2))

    r1, r2 = reference_forward(params, x, action)
    assert q1.shape == (B, 1) and q2.shape == (B, 1)
    # bf16 weights/activations in the kernel vs f32 reference -> tolerance relaxed
    # from the 1e-4 used by the (verified) all-f32 variant.
    assert jnp.allclose(q1, r1, rtol=2e-2, atol=2e-2)
    assert jnp.allclose(q2, r2, rtol=2e-2, atol=2e-2)
    print("KERNEL_OK")
</pallas_src>

<mosaic_0001>
module attributes {stable_mosaic.version = 11 : i64} {
  func.func @_fused_kernel(%arg0: i32, %arg1: memref<2x480xf32, #tpu.memory_space<vmem>>, %arg2: memref<2x4xf32, #tpu.memory_space<vmem>>, %arg3: memref<480x48xbf16, #tpu.memory_space<vmem>>, %arg4: memref<48x480xbf16, #tpu.memory_space<vmem>>, %arg5: memref<480x512xbf16, #tpu.memory_space<vmem>>, %arg6: memref<4x512xbf16, #tpu.memory_space<vmem>>, %arg7: memref<1x512xf32, #tpu.memory_space<vmem>>, %arg8: memref<256x256xbf16, #tpu.memory_space<vmem>>, %arg9: memref<1x256xf32, #tpu.memory_space<vmem>>, %arg10: memref<256x256xbf16, #tpu.memory_space<vmem>>, %arg11: memref<1x256xf32, #tpu.memory_space<vmem>>, %arg12: memref<256x2xf32, #tpu.memory_space<vmem>>, %arg13: memref<256x2xf32, #tpu.memory_space<vmem>>, %arg14: memref<1x2xf32, #tpu.memory_space<vmem>>, %arg15: memref<2x2xf32, #tpu.memory_space<vmem>>) attributes {dimension_semantics = [#tpu.dimension_semantics<parallel>], iteration_bounds = array<i64: 1>, scalar_prefetch = 0 : i64, scratch_operands = 0 : i64, tpu.core_type = #tpu.core_type<tc>, window_params = [{transform_indices = @transform_0, window_bounds = array<i64: 2, 480>}, {transform_indices = @transform_1, window_bounds = array<i64: 2, 4>}, {pipeline_mode = #tpu.pipeline_mode<synchronous>, transform_indices = @transform_2, window_bounds = array<i64: 480, 48>}, {pipeline_mode = #tpu.pipeline_mode<synchronous>, transform_indices = @transform_3, window_bounds = array<i64: 48, 480>}, {pipeline_mode = #tpu.pipeline_mode<synchronous>, transform_indices = @transform_4, window_bounds = array<i64: 480, 512>}, {pipeline_mode = #tpu.pipeline_mode<synchronous>, transform_indices = @transform_5, window_bounds = array<i64: 4, 512>}, {pipeline_mode = #tpu.pipeline_mode<synchronous>, transform_indices = @transform_6, window_bounds = array<i64: 1, 512>}, {pipeline_mode = #tpu.pipeline_mode<synchronous>, transform_indices = @transform_7, window_bounds = array<i64: 256, 256>}, {pipeline_mode = #tpu.pipeline_mode<synchronous>, transform_indices = @transform_8, window_bounds = array<i64: 1, 256>}, {pipeline_mode = #tpu.pipeline_mode<synchronous>, transform_indices = @transform_9, window_bounds = array<i64: 256, 256>}, {pipeline_mode = #tpu.pipeline_mode<synchronous>, transform_indices = @transform_10, window_bounds = array<i64: 1, 256>}, {pipeline_mode = #tpu.pipeline_mode<synchronous>, transform_indices = @transform_11, window_bounds = array<i64: 256, 2>}, {pipeline_mode = #tpu.pipeline_mode<synchronous>, transform_indices = @transform_12, window_bounds = array<i64: 256, 2>}, {pipeline_mode = #tpu.pipeline_mode<synchronous>, transform_indices = @transform_13, window_bounds = array<i64: 1, 2>}, {transform_indices = @transform_14, window_bounds = array<i64: 2, 2>}]} {
    %c0 = arith.constant 0 : index
    %c0_0 = arith.constant 0 : index
    %0 = vector.load %arg1[%c0, %c0_0] : memref<2x480xf32, #tpu.memory_space<vmem>>, vector<2x480xf32>
    %c0_1 = arith.constant 0 : index
    %c0_2 = arith.constant 0 : index
    %1 = vector.load %arg3[%c0_1, %c0_2] : memref<480x48xbf16, #tpu.memory_space<vmem>>, vector<480x48xbf16>
    %c0_3 = arith.constant 0 : index
    %c0_4 = arith.constant 0 : index
    %2 = vector.load %arg4[%c0_3, %c0_4] : memref<48x480xbf16, #tpu.memory_space<vmem>>, vector<48x480xbf16>
    %3 = arith.truncf %0 : vector<2x480xf32> to vector<2x480xbf16>
    %cst = arith.constant dense<0.000000e+00> : vector<2x48xf32>
    %4 = tpu.matmul %3, %1, %cst {dimension_numbers = #tpu.dot_dimension_numbers<[1], [0], [0], [1], [0, 0, 1, 1], [], []>} : vector<2x480xbf16>, vector<480x48xbf16>, vector<2x48xf32> -> vector<2x48xf32>
    %cst_5 = arith.constant 1.000000e-01 : f32
    %5 = vector.broadcast %cst_5 : f32 to vector<2x48xf32>
    %6 = arith.mulf %4, %5 : vector<2x48xf32>
    %7 = arith.truncf %6 : vector<2x48xf32> to vector<2x48xbf16>
    %cst_6 = arith.constant dense<0.000000e+00> : vector<2x480xf32>
    %8 = tpu.matmul %7, %2, %cst_6 {dimension_numbers = #tpu.dot_dimension_numbers<[1], [0], [0], [1], [0, 0, 1, 1], [], []>} : vector<2x48xbf16>, vector<48x480xbf16>, vector<2x480xf32> -> vector<2x480xf32>
    %9 = arith.subf %0, %8 : vector<2x480xf32>
    %10 = arith.mulf %9, %9 : vector<2x480xf32>
    %11 = arith.truncf %10 : vector<2x480xf32> to vector<2x480xbf16>
    %cst_7 = arith.constant dense<0.000000e+00> : vector<2x48xf32>
    %12 = tpu.matmul %11, %1, %cst_7 {dimension_numbers = #tpu.dot_dimension_numbers<[1], [0], [0], [1], [0, 0, 1, 1], [], []>} : vector<2x480xbf16>, vector<480x48xbf16>, vector<2x48xf32> -> vector<2x48xf32>
    %cst_8 = arith.constant 1.000000e-01 : f32
    %13 = vector.broadcast %cst_8 : f32 to vector<2x48xf32>
    %14 = arith.mulf %12, %13 : vector<2x48xf32>
    %cst_9 = arith.constant 9.99999997E-7 : f32
    %15 = vector.broadcast %cst_9 : f32 to vector<2x48xf32>
    %16 = arith.addf %14, %15 : vector<2x48xf32>
    %17 = math.rsqrt %16 : vector<2x48xf32>
    %18 = arith.truncf %17 : vector<2x48xf32> to vector<2x48xbf16>
    %cst_10 = arith.constant dense<0.000000e+00> : vector<2x480xf32>
    %19 = tpu.matmul %18, %2, %cst_10 {dimension_numbers = #tpu.dot_dimension_numbers<[1], [0], [0], [1], [0, 0, 1, 1], [], []>} : vector<2x48xbf16>, vector<48x480xbf16>, vector<2x480xf32> -> vector<2x480xf32>
    %20 = arith.mulf %9, %19 : vector<2x480xf32>
    %21 = arith.truncf %20 : vector<2x480xf32> to vector<2x480xbf16>
    %c0_11 = arith.constant 0 : index
    %c0_12 = arith.constant 0 : index
    %22 = vector.load %arg5[%c0_11, %c0_12] : memref<480x512xbf16, #tpu.memory_space<vmem>>, vector<480x512xbf16>
    %cst_13 = arith.constant dense<0.000000e+00> : vector<2x512xf32>
    %23 = tpu.matmul %21, %22, %cst_13 {dimension_numbers = #tpu.dot_dimension_numbers<[1], [0], [0], [1], [0, 0, 1, 1], [], []>} : vector<2x480xbf16>, vector<480x512xbf16>, vector<2x512xf32> -> vector<2x512xf32>
    %c0_14 = arith.constant 0 : index
    %c0_15 = arith.constant 0 : index
    %24 = vector.load %arg2[%c0_14, %c0_15] : memref<2x4xf32, #tpu.memory_space<vmem>>, vector<2x4xf32>
    %25 = arith.truncf %24 : vector<2x4xf32> to vector<2x4xbf16>
    %c0_16 = arith.constant 0 : index
    %c0_17 = arith.constant 0 : index
    %26 = vector.load %arg6[%c0_16, %c0_17] : memref<4x512xbf16, #tpu.memory_space<vmem>>, vector<4x512xbf16>
    %cst_18 = arith.constant dense<0.000000e+00> : vector<2x512xf32>
    %27 = tpu.matmul %25, %26, %cst_18 {dimension_numbers = #tpu.dot_dimension_numbers<[1], [0], [0], [1], [0, 0, 1, 1], [], []>} : vector<2x4xbf16>, vector<4x512xbf16>, vector<2x512xf32> -> vector<2x512xf32>
    %28 = arith.addf %23, %27 : vector<2x512xf32>
    %c0_19 = arith.constant 0 : index
    %c0_20 = arith.constant 0 : index
    %29 = vector.load %arg7[%c0_19, %c0_20] : memref<1x512xf32, #tpu.memory_space<vmem>>, vector<1x512xf32>
    %30 = vector.broadcast %29 : vector<1x512xf32> to vector<2x512xf32>
    %31 = arith.addf %28, %30 : vector<2x512xf32>
    %cst_21 = arith.constant 0.000000e+00 : f32
    %32 = vector.broadcast %cst_21 : f32 to vector<2x512xf32>
    %33 = arith.maximumf %31, %32 : vector<2x512xf32>
    %34 = vector.extract_strided_slice %33 {offsets = [0, 0], sizes = [2, 256], strides = [1, 1]} : vector<2x512xf32> to vector<2x256xf32>
    %35 = vector.extract_strided_slice %33 {offsets = [0, 256], sizes = [2, 256], strides = [1, 1]} : vector<2x512xf32> to vector<2x256xf32>
    %36 = arith.truncf %34 : vector<2x256xf32> to vector<2x256xbf16>
    %c0_22 = arith.constant 0 : index
    %c0_23 = arith.constant 0 : index
    %37 = vector.load %arg8[%c0_22, %c0_23] : memref<256x256xbf16, #tpu.memory_space<vmem>>, vector<256x256xbf16>
    %cst_24 = arith.constant dense<0.000000e+00> : vector<2x256xf32>
    %38 = tpu.matmul %36, %37, %cst_24 {dimension_numbers = #tpu.dot_dimension_numbers<[1], [0], [0], [1], [0, 0, 1, 1], [], []>} : vector<2x256xbf16>, vector<256x256xbf16>, vector<2x256xf32> -> vector<2x256xf32>
    %c0_25 = arith.constant 0 : index
    %c0_26 = arith.constant 0 : index
    %39 = vector.load %arg9[%c0_25, %c0_26] : memref<1x256xf32, #tpu.memory_space<vmem>>, vector<1x256xf32>
    %40 = vector.broadcast %39 : vector<1x256xf32> to vector<2x256xf32>
    %41 = arith.addf %38, %40 : vector<2x256xf32>
    %cst_27 = arith.constant 0.000000e+00 : f32
    %42 = vector.broadcast %cst_27 : f32 to vector<2x256xf32>
    %43 = arith.maximumf %41, %42 : vector<2x256xf32>
    %44 = arith.truncf %35 : vector<2x256xf32> to vector<2x256xbf16>
    %c0_28 = arith.constant 0 : index
    %c0_29 = arith.constant 0 : index
    %45 = vector.load %arg10[%c0_28, %c0_29] : memref<256x256xbf16, #tpu.memory_space<vmem>>, vector<256x256xbf16>
    %cst_30 = arith.constant dense<0.000000e+00> : vector<2x256xf32>
    %46 = tpu.matmul %44, %45, %cst_30 {dimension_numbers = #tpu.dot_dimension_numbers<[1], [0], [0], [1], [0, 0, 1, 1], [], []>} : vector<2x256xbf16>, vector<256x256xbf16>, vector<2x256xf32> -> vector<2x256xf32>
    %c0_31 = arith.constant 0 : index
    %c0_32 = arith.constant 0 : index
    %47 = vector.load %arg11[%c0_31, %c0_32] : memref<1x256xf32, #tpu.memory_space<vmem>>, vector<1x256xf32>
    %48 = vector.broadcast %47 : vector<1x256xf32> to vector<2x256xf32>
    %49 = arith.addf %46, %48 : vector<2x256xf32>
    %cst_33 = arith.constant 0.000000e+00 : f32
    %50 = vector.broadcast %cst_33 : f32 to vector<2x256xf32>
    %51 = arith.maximumf %49, %50 : vector<2x256xf32>
    %c0_34 = arith.constant 0 : index
    %c0_35 = arith.constant 0 : index
    %52 = vector.load %arg12[%c0_34, %c0_35] : memref<256x2xf32, #tpu.memory_space<vmem>>, vector<256x2xf32>
    %cst_36 = arith.constant dense<0.000000e+00> : vector<2x2xf32>
    %53 = tpu.matmul %43, %52, %cst_36 {dimension_numbers = #tpu.dot_dimension_numbers<[1], [0], [0], [1], [0, 0, 1, 1], [], []>} : vector<2x256xf32>, vector<256x2xf32>, vector<2x2xf32> -> vector<2x2xf32>
    %c0_37 = arith.constant 0 : index
    %c0_38 = arith.constant 0 : index
    %54 = vector.load %arg13[%c0_37, %c0_38] : memref<256x2xf32, #tpu.memory_space<vmem>>, vector<256x2xf32>
    %cst_39 = arith.constant dense<0.000000e+00> : vector<2x2xf32>
    %55 = tpu.matmul %51, %54, %cst_39 {dimension_numbers = #tpu.dot_dimension_numbers<[1], [0], [0], [1], [0, 0, 1, 1], [], []>} : vector<2x256xf32>, vector<256x2xf32>, vector<2x2xf32> -> vector<2x2xf32>
    %56 = arith.addf %53, %55 : vector<2x2xf32>
    %c0_40 = arith.constant 0 : index
    %c0_41 = arith.constant 0 : index
    %57 = vector.load %arg14[%c0_40, %c0_41] : memref<1x2xf32, #tpu.memory_space<vmem>>, vector<1x2xf32>
    %58 = vector.broadcast %57 : vector<1x2xf32> to vector<2x2xf32>
    %59 = arith.addf %56, %58 : vector<2x2xf32>
    %c0_42 = arith.constant 0 : index
    %c0_43 = arith.constant 0 : index
    %60 = vector.load %arg15[%c0_42, %c0_43] : memref<2x2xf32, #tpu.memory_space<vmem>>, vector<2x2xf32>
    tpu.vector_store %arg15[%c0_42, %c0_43], %59 {strides = array<i32>} : memref<2x2xf32, #tpu.memory_space<vmem>>, vector<2x2xf32>,
    return
  }
  func.func @transform_0(%arg0: i32) -> (i32, i32) {
    %c0_i32 = arith.constant 0 : i32
    %c0_i32_0 = arith.constant 0 : i32
    return %arg0, %c0_i32 : i32, i32
  }
  func.func @transform_1(%arg0: i32) -> (i32, i32) {
    %c0_i32 = arith.constant 0 : i32
    %c0_i32_0 = arith.constant 0 : i32
    return %arg0, %c0_i32 : i32, i32
  }
  func.func @transform_2(%arg0: i32) -> (i32, i32) {
    %c0_i32 = arith.constant 0 : i32
    %c0_i32_0 = arith.constant 0 : i32
    %c0_i32_1 = arith.constant 0 : i32
    return %c0_i32, %c0_i32_0 : i32, i32
  }
  func.func @transform_3(%arg0: i32) -> (i32, i32) {
    %c0_i32 = arith.constant 0 : i32
    %c0_i32_0 = arith.constant 0 : i32
    %c0_i32_1 = arith.constant 0 : i32
    return %c0_i32, %c0_i32_0 : i32, i32
  }
  func.func @transform_4(%arg0: i32) -> (i32, i32) {
    %c0_i32 = arith.constant 0 : i32
    %c0_i32_0 = arith.constant 0 : i32
    %c0_i32_1 = arith.constant 0 : i32
    return %c0_i32, %c0_i32_0 : i32, i32
  }
  func.func @transform_5(%arg0: i32) -> (i32, i32) {
    %c0_i32 = arith.constant 0 : i32
    %c0_i32_0 = arith.constant 0 : i32
    %c0_i32_1 = arith.constant 0 : i32
    return %c0_i32, %c0_i32_0 : i32, i32
  }
  func.func @transform_6(%arg0: i32) -> (i32, i32) {
    %c0_i32 = arith.constant 0 : i32
    %c0_i32_0 = arith.constant 0 : i32
    %c0_i32_1 = arith.constant 0 : i32
    return %c0_i32, %c0_i32_0 : i32, i32
  }
  func.func @transform_7(%arg0: i32) -> (i32, i32) {
    %c0_i32 = arith.constant 0 : i32
    %c0_i32_0 = arith.constant 0 : i32
    %c0_i32_1 = arith.constant 0 : i32
    return %c0_i32, %c0_i32_0 : i32, i32
  }
  func.func @transform_8(%arg0: i32) -> (i32, i32) {
    %c0_i32 = arith.constant 0 : i32
    %c0_i32_0 = arith.constant 0 : i32
    %c0_i32_1 = arith.constant 0 : i32
    return %c0_i32, %c0_i32_0 : i32, i32
  }
  func.func @transform_9(%arg0: i32) -> (i32, i32) {
    %c0_i32 = arith.constant 0 : i32
    %c0_i32_0 = arith.constant 0 : i32
    %c0_i32_1 = arith.constant 0 : i32
    return %c0_i32, %c0_i32_0 : i32, i32
  }
  func.func @transform_10(%arg0: i32) -> (i32, i32) {
    %c0_i32 = arith.constant 0 : i32
    %c0_i32_0 = arith.constant 0 : i32
    %c0_i32_1 = arith.constant 0 : i32
    return %c0_i32, %c0_i32_0 : i32, i32
  }
  func.func @transform_11(%arg0: i32) -> (i32, i32) {
    %c0_i32 = arith.constant 0 : i32
    %c0_i32_0 = arith.constant 0 : i32
    %c0_i32_1 = arith.constant 0 : i32
    return %c0_i32, %c0_i32_0 : i32, i32
  }
  func.func @transform_12(%arg0: i32) -> (i32, i32) {
    %c0_i32 = arith.constant 0 : i32
    %c0_i32_0 = arith.constant 0 : i32
    %c0_i32_1 = arith.constant 0 : i32
    return %c0_i32, %c0_i32_0 : i32, i32
  }
  func.func @transform_13(%arg0: i32) -> (i32, i32) {
    %c0_i32 = arith.constant 0 : i32
    %c0_i32_0 = arith.constant 0 : i32
    %c0_i32_1 = arith.constant 0 : i32
    return %c0_i32, %c0_i32_0 : i32, i32
  }
  func.func @transform_14(%arg0: i32) -> (i32, i32) {
    %c0_i32 = arith.constant 0 : i32
    %c0_i32_0 = arith.constant 0 : i32
    return %arg0, %c0_i32 : i32, i32
  }
}

</mosaic_0001>

<bundles_post_ra>
// kernel: twinned_q_forward.1
= control target key start
LH: loop header
LB: loop body
LE: loop exit
PB: predicated region body
PF: predicated region fallthrough
CT: control target
= control target key end

     0   :  { %19 = vsyncpa [#allocation3], 0  ;;  %s3306_s29 = smov [#allocation2]   ;;  %s4173_s0 = inlined_call_operand.vmem [shape: f32[2,480], index: 0, kind: input, shape index: {}]   ;;  %s4174_s1 = inlined_call_operand.vmem [shape: f32[2,4], index: 1, kind: input, shape index: {}]   ;;  %s4175_s2 = inlined_call_operand.vmem [shape: bf16[480,48], index: 2, kind: input, shape index: {}]   ;;  %s4176_s3 = inlined_call_operand.vmem [shape: bf16[48,480], index: 3, kind: input, shape index: {}]   ;;  %s4177_s4 = inlined_call_operand.hbm [shape: bf16[480,512], index: 4, kind: input, shape index: {}]   ;;  %s4178_s5 = inlined_call_operand.vmem [shape: bf16[4,512], index: 5, kind: input, shape index: {}]   ;;  %s4179_s6 = inlined_call_operand.vmem [shape: f32[1,512], index: 6, kind: input, shape index: {}]   ;;  %s4180_s7 = inlined_call_operand.vmem [shape: bf16[256,256], index: 7, kind: input, shape index: {}]   ;;  %s4181_s8 = inlined_call_operand.vmem [shape: f32[1,256], index: 8, kind: input, shape index: {}]   ;;  %s4182_s9 = inlined_call_operand.vmem [shape: bf16[256,256], index: 9, kind: input, shape index: {}]   ;;  %s4183_s10 = inlined_call_operand.vmem [shape: f32[1,256], index: 10, kind: input, shape index: {}]   ;;  %s4184_s11 = inlined_call_operand.vmem [shape: f32[256,2], index: 11, kind: input, shape index: {}]   ;;  %s4185_s12 = inlined_call_operand.vmem [shape: f32[256,2], index: 12, kind: input, shape index: {}]   ;;  %s4186_s13 = inlined_call_operand.vmem [shape: f32[1,2], index: 13, kind: input, shape index: {}]   ;;  %s4187_s14 = inlined_call_operand.vmem [shape: f32[2,2], index: 14, kind: output, shape index: {}]  }
   0x1   :  { %s33_s30 = sshll.u32 %s3306_s29, 4  ;;  %s34_s30 = int_to_ptr.vmem [resolvable:$true] %s33_s30 }
   0x2   :  { %s3292_s15 = scalar_lea.vmem %s34_s30, 15360  ;;  %p3297_p1 = scmp.lt.s32.totalorder %s34_s30, %s34_s30 }
   0x3   :  { %p3293_p0 = scmp.ne.s32.totalorder %s34_s30, %s3292_s15  ;;  %p3298_p2 = scmp.lt.s32.totalorder %s3292_s15, %s3292_s15 }
   0x5   :  { %p3299_p3 = por %p3298_p2, %p3297_p1 }
   0x7   :  { %p3300_p4 = pnand %p3299_p3, %p3293_p0 }
   0x9   :  { %3303 = shalt.err (!%p3300_p4)
}
   0xa   :  { %s3307_s16 = smov 256   ;;  %s3308_s17 = smov 16  }
   0xb   :  { %39 = dma.hbm_to_vmem [thread:$0]  %s4177_s4, 15360, %s34_s30, [#allocation3], %s3307_s16, %s3307_s16, %s3308_s17  }
   0xc   :  { %3304 = dma.done.wait [#allocation3], 15360  }
   0xd   :  { %3305 = vsyncadd [#allocation3], 4294951936  ;;  %v3309_v0 = vmov 0   ;;  %v3393_v1 = vld [vmem:[%s4175_s2 + $0xb8] sm:$0xff]   ;;  %v3399_v2 = vld [vmem:[%s4175_s2 + $0xb0] sm:$0xff]   ;;  %v140_v17 = vlaneseq  ;;  %vm341_vm0 = vcmask 785408  }
   0xe   :  { %385 = vmatprep.subr.bf16.mxu1 %v3309_v0  ;;  %v3405_v3 = vld [vmem:[%s4175_s2 + $0x78] sm:$0xff]   ;;  %v3416_v5 = vld [vmem:[%s4175_s2 + $0xa8] sm:$0xff]   ;;  %v3424_v6 = vld [vmem:[%s4175_s2 + $0x70] sm:$0xff]   ;;  %v3310_v15 = vmov 1983009808   ;;  %vm487_vm1 = vcmask 392192  }
   0xf   :  { %386 = vmatpush1.bf16.msra.mxu1 %v3393_v1  ;;  %v3410_v4 = vld [vmem:[%s4175_s2 + $0x38] sm:$0xff]   ;;  %2837 = vmatprep.subr.bf16.mxu0 %v3405_v3  ;;  %v3429_v7 = vld [vmem:[%s4175_s2 + $0x30] sm:$0xff]   ;;  %v3434_v8 = vld [vmem:[%s4175_s2 + $0xa0] sm:$0xff]   ;;  %v138_v16 = vunpack.c.l.s4 %v3310_v15  ;;  %v3494_v22 = vshrl.u32 %v140_v17, 7  ;;  %vm989_vm2 = vcmask 1041408   ;;  %vm985_vm3 = vcmask 31744  }
  0x10   :  { %387 = vmatprep.subr.bf16.mxu1 %v3309_v0  ;;  %2838 = vmatpush3.bf16.msra.mxu0 %v3410_v4  ;;  %v3441_v9 = vld [vmem:[%s4175_s2 + $0x68] sm:$0xff]   ;;  %v3454_v11 = vld [vmem:[%s4175_s2 + $0x60] sm:$0xff]   ;;  %v3460_v12 = vld [vmem:[%s4175_s2 + $0x98] sm:$0xff]   ;;  %vm2591_vm4 = vcmask 9216  }
  0x11   :  { %2839 = vmatprep.subr.bf16.mxu0 %v3424_v6  ;;  %v3448_v10 = vld [vmem:[%s4175_s2 + $0x28] sm:$0xff]   ;;  %v3467_v13 = vld [vmem:[%s4175_s2 + $0x20] sm:$0xff]   ;;  %v3473_v14 = vld [vmem:[%s4175_s2 + $0x58] sm:$0xff]   ;;  %v139_v21 = vunpack.c.0.s8 %v138_v16 }
  0x12   :  { %v3479_v18 = vld [vmem:[%s4175_s2 + $0x90] sm:$0xff]   ;;  %v3486_v19 = vld [vmem:[%s4175_s2 + $0x18] sm:$0xff]   ;;  %v3500_v23 = vld [vmem:[%s4175_s2 + $0x88] sm:$0xff]  }
  0x13   :  { %388 = vmatpush1.bf16.msra.mxu1 %v3399_v2  ;;  %v3492_v20 = vld [vmem:[%s4175_s2 + $0x50] sm:$0xff]   ;;  %v3513_v25 = vld [vmem:[%s4175_s2 + $0x48] sm:$0xff]   ;;  %v3516_v26 = vsub.s32 %v139_v21, %v3494_v22  ;;  %v2971_v27 = vld [vmem:[%s4175_s2 + $0x80] sm:$0xff]  }
  0x14   :  { %389 = vmatprep.subr.bf16.mxu1 %v3309_v0  ;;  %2840 = vmatpush3.bf16.msra.mxu0 %v3429_v7  ;;  %v3507_v24 = vld [vmem:[%s4175_s2 + $0x10] sm:$0xff]   ;;  %v3525_v28 = vld [vmem:[%s4175_s2 + $0x8] sm:$0xff]   ;;  %v3532_v29 = vld [vmem:[%s4173_s0] sm:$0xff] }
  0x15   :  { %2841 = vmatprep.subr.bf16.mxu0 %v3441_v9  ;;  %v3538_v30 = vld [vmem:[%s4175_s2 + $0x40] sm:$0xff]   ;;  %v143_v31 = vrot.slane %v3532_v29, %v3516_v26  ;;  %v136_v32 = vcombine.high %v3532_v29, %v3532_v29  ;;  %v2974_v33 = vld [vmem:[%s4175_s2 + $0xe8] sm:$0xff]   ;;  %v2980_v42 = vld [vmem:[%s4175_s2 + $0xd8] sm:$0xff]  }
  0x16   :  { %v3550_v34 = vld [vmem:[%s4175_s2] sm:$0xff]   ;;  %v2983_v43 = vld [vmem:[%s4175_s2 + $0xd0] sm:$0xff]   ;;  %v2984_v44 = vld [vmem:[%s4175_s2 + $0xc8] sm:$0xff]  }
  0x17   :  { %390 = vmatpush1.bf16.msra.mxu1 %v3416_v5  ;;  %v151_v35 = vcombine.high %v143_v31, %v143_v31  ;;  %v150_v36 = vrot.slane %v136_v32, %v3516_v26  ;;  %v2977_v37 = vld [vmem:[%s4175_s2 + $0xe0] sm:$0xff]   ;;  %v157_v40 = vpack.c.bf16 %v143_v31, %v143_v31  ;;  %v3636_v53 = vld [vmem:[%s4176_s3 + $0x4c] ss:$16 sps:$4 sm:$0xff]   ;;  %v3667_v16 = vld [vmem:[%s4176_s3 + $0x8] ss:$16 sps:$4 sm:$0xff]  }
  0x18   :  { %391 = vmatprep.subr.bf16.mxu1 %v3309_v0  ;;  %2842 = vmatpush3.bf16.msra.mxu0 %v3448_v10  ;;  %v2985_v45 = vld [vmem:[%s4175_s2 + $0xc0] sm:$0xff]   ;;  %v3661_v15 = vld [vmem:[%s4176_s3 + $0xc] ss:$16 sps:$4 sm:$0xff]  }
  0x19   :  { %2843 = vmatprep.subr.bf16.mxu0 %v3454_v11  ;;  %v158_v38 = vpack.c.bf16 %v151_v35, %v151_v35  ;;  %v152_v39 = vcombine.high %v150_v36, %v150_v36  ;;  %v159_v46 = vpack.c.bf16 %v150_v36, %v150_v36  ;;  %v3602_v47 = vld [vmem:[%s4176_s3 + $0x40] ss:$16 sps:$4 sm:$0xff]   ;;  %v2989_v48 = vld [vmem:[%s4176_s3 + $0x44] ss:$16 sps:$4 sm:$0xff]  }
  0x1a   :  { %v3611_v49 = vld [vmem:[%s4176_s3 + $0x24] ss:$16 sps:$4 sm:$0xff]   ;;  %v3617_v50 = vld [vmem:[%s4176_s3 + $0x20] ss:$16 sps:$4 sm:$0xff]  }
  0x1b   :  { %392 = vmatpush1.bf16.msra.mxu1 %v3434_v8  ;;  %377 = vmatprep.mubr.bf16.mxu0 %v158_v38  ;;  %v160_v41 = vpack.c.bf16 %v152_v39, %v152_v39  ;;  %v3624_v51 = vld [vmem:[%s4176_s3 + $0x4] ss:$16 sps:$4 sm:$0xff]   ;;  %v3629_v52 = vld [vmem:[%s4176_s3] ss:$16 sps:$4 sm:$0xff]  }
  0x1c   :  { %393 = vmatprep.subr.bf16.mxu1 %v3309_v0  ;;  %2844 = vmatpush3.bf16.msra.mxu0 %v3467_v13  ;;  %v964_v39 = vld [vmem:[%s4174_s1] sm:$0x3] }
  0x1d   :  { %2845 = vmatprep.subr.bf16.mxu0 %v3473_v14  ;;  %2628 = vmatprep.mubr.msk.bf16.mxu1 %vm341_vm0, %v160_v41  ;;  %v3015_v41 = vld [vmem:[#allocation2 + $0x2e0] ss:$16 sps:$4 sm:$0xff]  }
  0x1f   :  { %394 = vmatpush1.bf16.msra.mxu1 %v3460_v12 }
  0x20   :  { %395 = vmatprep.subr.bf16.mxu1 %v3309_v0  ;;  %2846 = vmatpush3.bf16.msra.mxu0 %v3486_v19 }
  0x21   :  { %2847 = vmatprep.subr.bf16.mxu0 %v3492_v20 }
  0x23   :  { %396 = vmatpush1.bf16.msra.mxu1 %v3479_v18 }
  0x24   :  { %397 = vmatprep.subr.bf16.mxu1 %v3309_v0  ;;  %2848 = vmatpush3.bf16.msra.mxu0 %v3507_v24 }
  0x25   :  { %2849 = vmatprep.subr.bf16.mxu0 %v3513_v25 }
  0x27   :  { %398 = vmatpush1.bf16.msra.mxu1 %v3500_v23 }
  0x28   :  { %399 = vmatprep.subr.bf16.mxu1 %v3309_v0  ;;  %2850 = vmatpush3.bf16.msra.mxu0 %v3525_v28 }
  0x29   :  { %2851 = vmatprep.subr.bf16.mxu0 %v3538_v30 }
  0x2b   :  { %400 = vmatpush1.bf16.msra.mxu1 %v2971_v27 }
  0x2c   :  { %405 = vmatprep.subr.bf16.mxu1 %v3309_v0  ;;  %2852 = vmatpush3.bf16.msra.mxu0 %v3550_v34 }
  0x2d   :  { %501 = vmatprep.subr.bf16.mxu0 %v2989_v48 }
  0x2f   :  { %406 = vmatpush2.bf16.msra.mxu1 %v2974_v33  ;;  %378 = vmatmul.mubr.bf16.vlgmr.msra.gmra.mxu0 %v157_v40  ;;  %v3715_v40 = vpack.c.bf16 %v964_v39, %v964_v39  ;;  %v3071_v39 = vld [vmem:[#allocation2 + $0x384] ss:$16 sps:$4 sm:$0xff]  }
  0x30   :  { %407 = vmatprep.subr.bf16.mxu1 %v3309_v0  ;;  %523 = vmatprep.mubr.bf16.mxu0 %v3309_v0 }
  0x31   :  { %502 = vmatpush1.bf16.msra.mxu0 %v3602_v47 }
  0x32   :  { %503 = vmatprep.subr.bf16.mxu0 %v3611_v49 }
  0x33   :  { %408 = vmatpush2.bf16.msra.mxu1 %v2977_v37 }
  0x34   :  { %409 = vmatprep.subr.bf16.mxu1 %v3309_v0 }
  0x35   :  { %504 = vmatpush1.bf16.msra.mxu0 %v3617_v50 }
  0x36   :  { %505 = vmatprep.subr.bf16.mxu0 %v3624_v51 }
  0x37   :  { %410 = vmatpush2.bf16.msra.mxu1 %v2980_v42 }
  0x38   :  { %411 = vmatprep.subr.bf16.mxu1 %v3309_v0 }
  0x39   :  { %506 = vmatpush1.bf16.msra.mxu0 %v3629_v52 }
  0x3a   :  { %542 = vmatprep.subr.bf16.mxu0 %v3636_v53 }
  0x3b   :  { %412 = vmatpush2.bf16.msra.mxu1 %v2983_v43 }
  0x3c   :  { %413 = vmatprep.subr.bf16.mxu1 %v3309_v0 }
  0x3f   :  { %414 = vmatpush2.bf16.msra.mxu1 %v2984_v44 }
  0x40   :  { %415 = vmatprep.subr.bf16.mxu1 %v3309_v0 }
  0x43   :  { %416 = vmatpush2.bf16.msra.mxu1 %v2985_v45 }
  0x44   :  { %666 = vmatprep.subr.bf16.mxu1 %v3309_v0 }
  0x46   :  { %418 = vmatmul.mubr.bf16.vlgmr.msra.gmra.mxu1 %v159_v46  ;;  %v3029_v46 = vld [vmem:[#allocation2 + $0x2a4] ss:$16 sps:$4 sm:$0xff]  }
  0x47   :  { %667 = vmatpush1.bf16.msra.mxu1 %v3393_v1  ;;  %v3642_v1 = vld [vmem:[%s4176_s3 + $0x48] ss:$16 sps:$4 sm:$0xff]  }
  0x48   :  { %668 = vmatprep.subr.bf16.mxu1 %v3309_v0 }
  0x4b   :  { %669 = vmatpush1.bf16.msra.mxu1 %v3399_v2 }
  0x4c   :  { %670 = vmatprep.subr.bf16.mxu1 %v3309_v0 }
  0x4f   :  { %671 = vmatpush1.bf16.msra.mxu1 %v3416_v5  ;;  %v3647_v5 = vld [vmem:[%s4176_s3 + $0x2c] ss:$16 sps:$4 sm:$0xff]  }
  0x50   :  { %672 = vmatprep.subr.bf16.mxu1 %v3309_v0 }
  0x53   :  { %673 = vmatpush1.bf16.msra.mxu1 %v3434_v8 }
  0x54   :  { %674 = vmatprep.subr.bf16.mxu1 %v3309_v0 }
  0x57   :  { %675 = vmatpush1.bf16.msra.mxu1 %v3460_v12  ;;  %v3654_v12 = vld [vmem:[%s4176_s3 + $0x28] ss:$16 sps:$4 sm:$0xff]  }
  0x58   :  { %676 = vmatprep.subr.bf16.mxu1 %v3309_v0 }
  0x5b   :  { %677 = vmatpush1.bf16.msra.mxu1 %v3479_v18 }
  0x5c   :  { %678 = vmatprep.subr.bf16.mxu1 %v3309_v0 }
  0x5f   :  { %679 = vmatpush1.bf16.msra.mxu1 %v3500_v23 }
  0x60   :  { %680 = vmatprep.subr.bf16.mxu1 %v3309_v0 }
  0x63   :  { %681 = vmatpush1.bf16.msra.mxu1 %v2971_v27 }
  0x64   :  { %686 = vmatprep.subr.bf16.mxu1 %v3309_v0 }
  0x67   :  { %687 = vmatpush2.bf16.msra.mxu1 %v2974_v33 }
  0x68   :  { %688 = vmatprep.subr.bf16.mxu1 %v3309_v0 }
  0x6b   :  { %689 = vmatpush2.bf16.msra.mxu1 %v2977_v37 }
  0x6c   :  { %690 = vmatprep.subr.bf16.mxu1 %v3309_v0 }
  0x6f   :  { %691 = vmatpush2.bf16.msra.mxu1 %v2980_v42  ;;  %v3017_v42 = vld [vmem:[#allocation2 + $0x2e4] ss:$16 sps:$4 sm:$0xff]  }
  0x70   :  { %692 = vmatprep.subr.bf16.mxu1 %v3309_v0 }
  0x73   :  { %693 = vmatpush2.bf16.msra.mxu1 %v2983_v43  ;;  %v3021_v43 = vld [vmem:[#allocation2 + $0x2c0] ss:$16 sps:$4 sm:$0xff]  }
  0x74   :  { %694 = vmatprep.subr.bf16.mxu1 %v3309_v0 }
  0x77   :  { %695 = vmatpush2.bf16.msra.mxu1 %v2984_v44  ;;  %v3023_v44 = vld [vmem:[#allocation2 + $0x2c4] ss:$16 sps:$4 sm:$0xff]  }
  0x78   :  { %696 = vmatprep.subr.bf16.mxu1 %v3309_v0 }
  0x7b   :  { %697 = vmatpush2.bf16.msra.mxu1 %v2985_v45  ;;  %v3027_v45 = vld [vmem:[#allocation2 + $0x2a0] ss:$16 sps:$4 sm:$0xff]  }
  0xef   :  { %v2853_v54 = vpop.f32.mrf.mxu0 }
  0xf1   :  { %v2854_v55 = vpop.f32.mrf.mxu0 }
  0xf2   :  { %v2855_v58 = vadd.f32 %v2854_v55, %v2853_v54  ;;  %v3053_v54 = vld [vmem:[#allocation2 + $0x224] ss:$16 sps:$4 sm:$0xff]  }
  0xf3   :  { %v2856_v56 = vpop.f32.mrf.mxu0 }
  0xf5   :  { %v2857_v57 = vpop.f32.mrf.mxu0 }
 0x106   :  { %v419_v59 = vpop.f32.mrf.mxu1 }
 0x107   :  { %v420_v60 = vadd.f32 %v2855_v58, %v419_v59 }
 0x108   :  { %v421_v61 = vpop.f32.mrf.mxu1 }
 0x109   :  { %v425_v62 = vmul.f32 0.1, %v420_v60 }
 0x10a   :  { %v422_v63 = vpop.f32.mrf.mxu1 }
 0x10b   :  { %v426_v2 = vpack.c.bf16 %v425_v62, %v425_v62 }
 0x10c   :  { %v423_v8 = vpop.f32.mrf.mxu1 }
 0x10d   :  { %2641 = vmatmul.mubr.msk.bf16.vlgmr.msra.gmra.mxu0 %vm487_vm1, %v426_v2 }
 0x10e   :  { %543 = vmatpush1.bf16.msra.mxu0 %v3642_v1  ;;  %564 = vmatprep.mubr.bf16.mxu0 %v3309_v0 }
 0x10f   :  { %544 = vmatprep.subr.bf16.mxu0 %v3647_v5 }
 0x112   :  { %545 = vmatpush1.bf16.msra.mxu0 %v3654_v12 }
 0x113   :  { %546 = vmatprep.subr.bf16.mxu0 %v3661_v15 }
 0x116   :  { %547 = vmatpush1.bf16.msra.mxu0 %v3667_v16 }
 0x117   :  { %2859 = vmatprep.subr.bf16.mxu0 %v3405_v3 }
 0x119   :  { %2642 = vmatmul.mubr.msk.bf16.vlgmr.msra.gmra.mxu0 %vm487_vm1, %v426_v2 }
 0x11a   :  { %2860 = vmatpush3.bf16.msra.mxu0 %v3410_v4 }
 0x11b   :  { %2861 = vmatprep.subr.bf16.mxu0 %v3424_v6 }
 0x11e   :  { %2862 = vmatpush3.bf16.msra.mxu0 %v3429_v7 }
 0x11f   :  { %2863 = vmatprep.subr.bf16.mxu0 %v3441_v9 }
 0x122   :  { %2864 = vmatpush3.bf16.msra.mxu0 %v3448_v10 }
 0x123   :  { %2865 = vmatprep.subr.bf16.mxu0 %v3454_v11 }
 0x126   :  { %2866 = vmatpush3.bf16.msra.mxu0 %v3467_v13 }
 0x127   :  { %2867 = vmatprep.subr.bf16.mxu0 %v3473_v14 }
 0x12a   :  { %2868 = vmatpush3.bf16.msra.mxu0 %v3486_v19 }
 0x12b   :  { %2869 = vmatprep.subr.bf16.mxu0 %v3492_v20 }
 0x12e   :  { %2870 = vmatpush3.bf16.msra.mxu0 %v3507_v24 }
 0x12f   :  { %2871 = vmatprep.subr.bf16.mxu0 %v3513_v25 }
 0x132   :  { %2872 = vmatpush3.bf16.msra.mxu0 %v3525_v28 }
 0x133   :  { %2873 = vmatprep.subr.bf16.mxu0 %v3538_v30 }
 0x136   :  { %2874 = vmatpush3.bf16.msra.mxu0 %v3550_v34 }
 0x137   :  { %723 = vmatprep.subr.bf16.mxu0 %v2989_v48  ;;  %v3035_v48 = vld [vmem:[#allocation2 + $0x284] ss:$16 sps:$4 sm:$0xff]  }
 0x1cd   :  { %v525_v3 = vpop.f32.mrf.mxu0 }
 0x1cf   :  { %v527_v4 = vpop.f32.mrf.mxu0 }
 0x1d0   :  { %v577_v10 = vcombine.low %v525_v3, %v527_v4 }
 0x1d1   :  { %v529_v6 = vpop.f32.mrf.mxu0 }
 0x1d2   :  { %v585_v17 = vrot.slane %v577_v10, %v3516_v26 }
 0x1d3   :  { %v530_v7 = vpop.f32.mrf.mxu0 }
 0x1d9   :  { %v566_v9 = vpop.f32.mrf.mxu0 }
 0x1db   :  { %v568_v11 = vpop.f32.mrf.mxu0 }
 0x1dc   :  { %v578_v13 = vcombine.low %v566_v9, %v568_v11  ;;  %v3007_v11 = vld [vmem:[#allocation2 + $0xe4] ss:$16 sps:$4 sm:$0xff]  }
 0x1dd   :  { %v570_v14 = vpop.f32.mrf.mxu0 }
 0x1de   :  { %v592_v18 = vrot.slane %v578_v13, %v3516_v26  ;;  %v3020_v13 = vld [vmem:[#allocation2 + $0x84] ss:$16 sps:$4 sm:$0xff]   ;;  %v3018_v14 = vld [vmem:[#allocation2 + $0x80] ss:$16 sps:$4 sm:$0xff]  }
 0x1df   :  { %v571_v19 = vpop.f32.mrf.mxu0 }
 0x1e0   :  { %v593_v20 = vcombine.low %v585_v17, %v592_v18  ;;  %v3026_v17 = vld [vmem:[#allocation2 + $0x64] ss:$16 sps:$4 sm:$0xff]   ;;  %v3030_v19 = vld [vmem:[#allocation2 + $0x40] ss:$16 sps:$4 sm:$0xff]  }
 0x1e1   :  { %v3032_v18 = vld [vmem:[#allocation2 + $0x44] ss:$16 sps:$4 sm:$0xff]  }
 0x1e2   :  { %v3691_v21 = vsub.f32 %v3532_v29, %v593_v20  ;;  %v966_v29 = vld [vmem:[%s4178_s5] sm:$0xff] }
 0x1e3   :  { %v968_v35 = vcombine.high %v966_v29, %v966_v29  ;;  %v975_v7 = vrot.slane %v966_v29, %v3516_v26  ;;  %v3038_v20 = vld [vmem:[#allocation2 + $0x24] ss:$16 sps:$4 sm:$0xff]   ;;  %v3060_v29 = vld [vmem:[#allocation2 + $0x1a0] ss:$16 sps:$4 sm:$0xff]  }
 0x1e4   :  { %v596_v23 = vmul.f32 %v3691_v21, %v3691_v21 }
 0x1e5   :  { %v982_v36 = vrot.slane %v968_v35, %v3516_v26  ;;  %v983_v9 = vcombine.high %v975_v7, %v975_v7  ;;  %v991_v10 = vsel %vm989_vm2, %v975_v7, 0  ;;  %v3065_v35 = vld [vmem:[#allocation2 + $0x3a4] ss:$16 sps:$4 sm:$0xff]  }
 0x1e6   :  { %v598_v24 = vcombine.high %v596_v23, %v596_v23  ;;  %v605_v25 = vrot.slane %v596_v23, %v3516_v26  ;;  %v3036_v23 = vld [vmem:[#allocation2 + $0x20] ss:$16 sps:$4 sm:$0xff]  }
 0x1e7   :  { %v984_v37 = vcombine.high %v982_v36, %v982_v36  ;;  %v997_v38 = vsel %vm989_vm2, %v982_v36, 0  ;;  %v3063_v36 = vld [vmem:[#allocation2 + $0x3a0] ss:$16 sps:$4 sm:$0xff]  }
 0x1e8   :  { %v613_v27 = vcombine.high %v605_v25, %v605_v25  ;;  %v612_v28 = vrot.slane %v598_v24, %v3516_v26  ;;  %v619_v32 = vpack.c.bf16 %v605_v25, %v605_v25  ;;  %v3044_v24 = vld [vmem:[#allocation2 + $0x4] ss:$16 sps:$4 sm:$0xff]   ;;  %v3042_v25 = vld [vmem:[#allocation2] ss:$16 sps:$4 sm:$0xff]  }
 0x1e9   :  { %2648 = vmatprep.subr.msk.bf16.mxu1 %vm989_vm2, %v984_v37  ;;  %v3066_v37 = vld [vmem:[#allocation2 + $0x180] ss:$16 sps:$4 sm:$0xff]  }
 0x1ea   :  { %v620_v30 = vpack.c.bf16 %v613_v27, %v613_v27  ;;  %v614_v31 = vcombine.high %v612_v28, %v612_v28  ;;  %v621_v34 = vpack.c.bf16 %v612_v28, %v612_v28  ;;  %v3050_v27 = vld [vmem:[#allocation2 + $0x1e4] ss:$16 sps:$4 sm:$0xff]   ;;  %v3048_v28 = vld [vmem:[#allocation2 + $0x1e0] ss:$16 sps:$4 sm:$0xff]  }
 0x1ec   :  { %658 = vmatprep.mubr.bf16.mxu0 %v620_v30  ;;  %v622_v33 = vpack.c.bf16 %v614_v31, %v614_v31  ;;  %v3056_v30 = vld [vmem:[#allocation2 + $0x1c4] ss:$16 sps:$4 sm:$0xff]   ;;  %v3054_v31 = vld [vmem:[#allocation2 + $0x1c0] ss:$16 sps:$4 sm:$0xff]  }
 0x1ed   :  { %659 = vmatmul.mubr.bf16.vlgmr.msra.gmra.mxu0 %v619_v32  ;;  %v3059_v32 = vld [vmem:[#allocation2 + $0x204] ss:$16 sps:$4 sm:$0xff]  }
 0x1ee   :  { %2643 = vmatprep.mubr.msk.bf16.mxu1 %vm341_vm0, %v622_v33  ;;  %724 = vmatpush1.bf16.msra.mxu0 %v3602_v47  ;;  %v3033_v47 = vld [vmem:[#allocation2 + $0x280] ss:$16 sps:$4 sm:$0xff]  }
 0x1ef   :  { %699 = vmatmul.mubr.bf16.vlgmr.msra.gmra.mxu1 %v621_v34  ;;  %725 = vmatprep.subr.bf16.mxu0 %v3611_v49  ;;  %v3039_v49 = vld [vmem:[#allocation2 + $0x260] ss:$16 sps:$4 sm:$0xff]   ;;  %v3062_v34 = vld [vmem:[#allocation2 + $0x1a4] ss:$16 sps:$4 sm:$0xff]  }
 0x1f0   :  { %745 = vmatprep.mubr.bf16.mxu0 %v3309_v0  ;;  %1075 = vmatprep.mubr.bf16.mxu1 %v3309_v0  ;;  %v3057_v33 = vld [vmem:[#allocation2 + $0x200] ss:$16 sps:$4 sm:$0xff]  }
 0x1f1   :  { %1058 = vmatpush1.bf16.msra.mxu1 %v997_v38  ;;  %v3068_v38 = vld [vmem:[#allocation2 + $0x184] ss:$16 sps:$4 sm:$0xff]  }
 0x1f2   :  { %726 = vmatpush1.bf16.msra.mxu0 %v3617_v50  ;;  %1728 = vmatprep.subr.bf16.mxu1 %v3017_v42  ;;  %v3041_v50 = vld [vmem:[#allocation2 + $0x264] ss:$16 sps:$4 sm:$0xff]   ;;  %v3072_v42 = vld [vmem:[#allocation2 + $0x160] ss:$16 sps:$4 sm:$0xff]  }
 0x1f3   :  { %727 = vmatprep.subr.bf16.mxu0 %v3624_v51  ;;  %v3045_v51 = vld [vmem:[#allocation2 + $0x240] ss:$16 sps:$4 sm:$0xff]  }
 0x1f6   :  { %728 = vmatpush1.bf16.msra.mxu0 %v3629_v52  ;;  %v3047_v52 = vld [vmem:[#allocation2 + $0x244] ss:$16 sps:$4 sm:$0xff]  }
 0x1f7   :  { %764 = vmatprep.subr.bf16.mxu0 %v3636_v53  ;;  %2649 = vmatmul.mubr.msk.bf16.vlgmr.msra.gmra.mxu1 %vm985_vm3, %v3715_v40  ;;  %v3051_v53 = vld [vmem:[#allocation2 + $0x220] ss:$16 sps:$4 sm:$0xff]  }
 0x1f8   :  { %1729 = vmatpush1.bf16.msra.mxu1 %v3015_v41  ;;  %v3074_v41 = vld [vmem:[#allocation2 + $0x164] ss:$16 sps:$4 sm:$0xff]  }
 0x1f9   :  { %1730 = vmatprep.subr.bf16.mxu1 %v3023_v44  ;;  %v3075_v44 = vld [vmem:[#allocation2 + $0x360] ss:$16 sps:$4 sm:$0xff]  }
 0x1fc   :  { %1731 = vmatpush1.bf16.msra.mxu1 %v3021_v43  ;;  %v3077_v43 = vld [vmem:[#allocation2 + $0x364] ss:$16 sps:$4 sm:$0xff]  }
 0x1fd   :  { %1732 = vmatprep.subr.bf16.mxu1 %v3029_v46  ;;  %v3078_v46 = vld [vmem:[#allocation2 + $0x140] ss:$16 sps:$4 sm:$0xff]  }
 0x200   :  { %1733 = vmatpush1.bf16.msra.mxu1 %v3027_v45  ;;  %v3080_v45 = vld [vmem:[#allocation2 + $0x144] ss:$16 sps:$4 sm:$0xff]  }
 0x201   :  { %1734 = vmatprep.subr.bf16.mxu1 %v3035_v48  ;;  %v3081_v48 = vld [vmem:[#allocation2 + $0x340] ss:$16 sps:$4 sm:$0xff]  }
 0x204   :  { %1735 = vmatpush1.bf16.msra.mxu1 %v3033_v47  ;;  %v3083_v47 = vld [vmem:[#allocation2 + $0x344] ss:$16 sps:$4 sm:$0xff]  }
 0x205   :  { %1736 = vmatprep.subr.bf16.mxu1 %v3041_v50  ;;  %v3084_v50 = vld [vmem:[#allocation2 + $0x120] ss:$16 sps:$4 sm:$0xff]  }
 0x208   :  { %1737 = vmatpush1.bf16.msra.mxu1 %v3039_v49  ;;  %v3086_v49 = vld [vmem:[#allocation2 + $0x124] ss:$16 sps:$4 sm:$0xff]  }
 0x209   :  { %1738 = vmatprep.subr.bf16.mxu1 %v3047_v52  ;;  %v3087_v52 = vld [vmem:[#allocation2 + $0x320] ss:$16 sps:$4 sm:$0xff]  }
 0x20c   :  { %1739 = vmatpush1.bf16.msra.mxu1 %v3045_v51  ;;  %v3089_v51 = vld [vmem:[#allocation2 + $0x324] ss:$16 sps:$4 sm:$0xff]  }
 0x20d   :  { %1740 = vmatprep.subr.bf16.mxu1 %v3053_v54  ;;  %v3092_v54 = vld [vmem:[#allocation2 + $0x104] ss:$16 sps:$4 sm:$0xff]  }
 0x210   :  { %1741 = vmatpush1.bf16.msra.mxu1 %v3051_v53  ;;  %v3090_v53 = vld [vmem:[#allocation2 + $0x100] ss:$16 sps:$4 sm:$0xff]  }
 0x211   :  { %1742 = vmatprep.subr.bf16.mxu1 %v3059_v32  ;;  %v3107_v32 = vld [vmem:[#allocation2 + $0xcc] ss:$16 sps:$4 sm:$0xff]  }
 0x214   :  { %1743 = vmatpush1.bf16.msra.mxu1 %v3057_v33  ;;  %v3102_v33 = vld [vmem:[#allocation2 + $0x2c8] ss:$16 sps:$4 sm:$0xff]  }
 0x215   :  { %1748 = vmatprep.subr.bf16.mxu1 %v3065_v35  ;;  %v3108_v35 = vld [vmem:[#allocation2 + $0x2a8] ss:$16 sps:$4 sm:$0xff]  }
 0x218   :  { %1749 = vmatpush2.bf16.msra.mxu1 %v3063_v36  ;;  %v3116_v36 = vld [vmem:[#allocation2 + $0x28c] ss:$16 sps:$4 sm:$0xff]  }
 0x219   :  { %1750 = vmatprep.subr.bf16.mxu1 %v3071_v39  ;;  %v3114_v39 = vld [vmem:[#allocation2 + $0x288] ss:$16 sps:$4 sm:$0xff]  }
 0x2ad   :  { %v2875_v55 = vpop.f32.mrf.mxu0 }
 0x2af   :  { %v2876_v56 = vpop.f32.mrf.mxu0  ;;  %v700_v57 = vpop.f32.mrf.mxu1 }
 0x2b0   :  { %v2877_v58 = vadd.f32 %v2876_v56, %v2875_v55  ;;  %v3093_v55 = vld [vmem:[#allocation2 + $0x300] ss:$16 sps:$4 sm:$0xff]   ;;  %v3095_v56 = vld [vmem:[#allocation2 + $0x304] ss:$16 sps:$4 sm:$0xff]  }
 0x2b1   :  { %v2878_v59 = vpop.f32.mrf.mxu0  ;;  %v702_v60 = vpop.f32.mrf.mxu1 }
 0x2b2   :  { %v701_v61 = vadd.f32 %v2877_v58, %v700_v57  ;;  %v3098_v57 = vld [vmem:[#allocation2 + $0x2ec] ss:$16 sps:$4 sm:$0xff]  }
 0x2b3   :  { %v2879_v62 = vpop.f32.mrf.mxu0  ;;  %v703_v63 = vpop.f32.mrf.mxu1  ;;  %v3101_v58 = vld [vmem:[#allocation2 + $0xec] ss:$16 sps:$4 sm:$0xff]  }
 0x2b4   :  { %v706_v2 = vmul.f32 0.1, %v701_v61 }
 0x2b5   :  { %v704_v8 = vpop.f32.mrf.mxu1 }
 0x2b6   :  { %v707_v3 = vadd.f32 1e-06, %v706_v2 }
 0x2b7   :  { %v3733_v59 = vpop.f32.mrf.mxu1 }
 0x2b8   :  { %3282 = vrsqrt.f32 %v707_v3 }
 0x2b9   :  { %v3735_v60 = vpop.f32.mrf.mxu1 }
 0x2bb   :  { %v1081_v61 = vpop.f32.mrf.mxu1 }
 0x2bc   :  { %v3144_v61 = vld [vmem:[#allocation2 + $0x3a8] ss:$16 sps:$4 sm:$0xff]  }
 0x2bd   :  { %v1082_v62 = vpop.f32.mrf.mxu1 }
 0x2be   :  { %v3152_v62 = vld [vmem:[#allocation2 + $0x38c] ss:$16 sps:$4 sm:$0xff]  }
 0x2c5   :  { %v3283_v4 = vpop.eup %3282 }
 0x2c6   :  { %v709_v6 = vpack.c.bf16 %v3283_v4, %v3283_v4 }
 0x2c8   :  { %2644 = vmatmul.mubr.msk.bf16.vlgmr.msra.gmra.mxu0 %vm487_vm1, %v709_v6 }
 0x2c9   :  { %765 = vmatpush1.bf16.msra.mxu0 %v3642_v1  ;;  %786 = vmatprep.mubr.bf16.mxu0 %v3309_v0  ;;  %v3005_v1 = vld [vmem:[#allocation2 + $0xe0] ss:$16 sps:$4 sm:$0xff]  }
 0x2ca   :  { %766 = vmatprep.subr.bf16.mxu0 %v3647_v5  ;;  %v3011_v5 = vld [vmem:[#allocation2 + $0xc4] ss:$16 sps:$4 sm:$0xff]  }
 0x2cd   :  { %767 = vmatpush1.bf16.msra.mxu0 %v3654_v12  ;;  %v3009_v12 = vld [vmem:[#allocation2 + $0xc0] ss:$16 sps:$4 sm:$0xff]  }
 0x2ce   :  { %768 = vmatprep.subr.bf16.mxu0 %v3661_v15  ;;  %v3014_v15 = vld [vmem:[#allocation2 + $0xa4] ss:$16 sps:$4 sm:$0xff]  }
 0x2d1   :  { %769 = vmatpush1.bf16.msra.mxu0 %v3667_v16  ;;  %v3012_v16 = vld [vmem:[#allocation2 + $0xa0] ss:$16 sps:$4 sm:$0xff]  }
 0x2d2   :  { %2646 = vmatprep.subr.msk.bf16.mxu0 %vm989_vm2, %v983_v9 }
 0x2d4   :  { %2645 = vmatmul.mubr.msk.bf16.vlgmr.msra.gmra.mxu0 %vm487_vm1, %v709_v6 }
 0x2d5   :  { %1017 = vmatpush1.bf16.msra.mxu0 %v991_v10  ;;  %1034 = vmatprep.mubr.bf16.mxu0 %v3309_v0  ;;  %v3024_v0 = vld [vmem:[#allocation2 + $0x60] ss:$16 sps:$4 sm:$0xff]  }
 0x2d6   :  { %1687 = vmatprep.subr.bf16.mxu0 %v3007_v11 }
 0x2dc   :  { %2647 = vmatmul.mubr.msk.bf16.vlgmr.msra.gmra.mxu0 %vm985_vm3, %v3715_v40  ;;  %v3069_v40 = vld [vmem:[#allocation2 + $0x380] ss:$16 sps:$4 sm:$0xff]  }
 0x2dd   :  { %1688 = vmatpush1.bf16.msra.mxu0 %v3005_v1  ;;  %1751 = vmatpush2.bf16.msra.mxu1 %v3069_v40  ;;  %v3122_v40 = vld [vmem:[#allocation2 + $0x26c] ss:$16 sps:$4 sm:$0xff]  }
 0x2de   :  { %1689 = vmatprep.subr.bf16.mxu0 %v3011_v5  ;;  %1752 = vmatprep.subr.bf16.mxu1 %v3077_v43  ;;  %v3120_v43 = vld [vmem:[#allocation2 + $0x268] ss:$16 sps:$4 sm:$0xff]  }
 0x2e1   :  { %1690 = vmatpush1.bf16.msra.mxu0 %v3009_v12  ;;  %1753 = vmatpush2.bf16.msra.mxu1 %v3075_v44  ;;  %v3128_v44 = vld [vmem:[#allocation2 + $0x24c] ss:$16 sps:$4 sm:$0xff]  }
 0x2e2   :  { %1691 = vmatprep.subr.bf16.mxu0 %v3014_v15  ;;  %1754 = vmatprep.subr.bf16.mxu1 %v3083_v47  ;;  %v3126_v47 = vld [vmem:[#allocation2 + $0x248] ss:$16 sps:$4 sm:$0xff]  }
 0x2e5   :  { %1692 = vmatpush1.bf16.msra.mxu0 %v3012_v16  ;;  %1755 = vmatpush2.bf16.msra.mxu1 %v3081_v48  ;;  %v3134_v48 = vld [vmem:[#allocation2 + $0x22c] ss:$16 sps:$4 sm:$0xff]  }
 0x2e6   :  { %1693 = vmatprep.subr.bf16.mxu0 %v3020_v13  ;;  %1756 = vmatprep.subr.bf16.mxu1 %v3089_v51  ;;  %v3132_v51 = vld [vmem:[#allocation2 + $0x228] ss:$16 sps:$4 sm:$0xff]  }
 0x2e9   :  { %1694 = vmatpush1.bf16.msra.mxu0 %v3018_v14  ;;  %1757 = vmatpush2.bf16.msra.mxu1 %v3087_v52  ;;  %v3140_v52 = vld [vmem:[#allocation2 + $0x20c] ss:$16 sps:$4 sm:$0xff]  }
 0x2ea   :  { %1695 = vmatprep.subr.bf16.mxu0 %v3026_v17  ;;  %1758 = vmatprep.subr.bf16.mxu1 %v3095_v56  ;;  %v3146_v56 = vld [vmem:[#allocation2 + $0x3ac] ss:$16 sps:$4 sm:$0xff]  }
 0x2ed   :  { %1696 = vmatpush1.bf16.msra.mxu0 %v3024_v0  ;;  %1759 = vmatpush2.bf16.msra.mxu1 %v3093_v55  ;;  %v3138_v55 = vld [vmem:[#allocation2 + $0x208] ss:$16 sps:$4 sm:$0xff]  }
 0x2ee   :  { %1697 = vmatprep.subr.bf16.mxu0 %v3032_v18  ;;  %1769 = vmatprep.subr.bf16.mxu1 %v3101_v58  ;;  %v3149_v58 = vld [vmem:[#allocation2 + $0x1ec] ss:$16 sps:$4 sm:$0xff]  }
 0x2f1   :  { %1698 = vmatpush1.bf16.msra.mxu0 %v3030_v19 }
 0x2f2   :  { %1699 = vmatprep.subr.bf16.mxu0 %v3038_v20 }
 0x2f5   :  { %1700 = vmatpush1.bf16.msra.mxu0 %v3036_v23 }
 0x2f6   :  { %1701 = vmatprep.subr.bf16.mxu0 %v3044_v24  ;;  %v3096_v24 = vld [vmem:[#allocation2 + $0x2e8] ss:$16 sps:$4 sm:$0xff]  }
 0x2f9   :  { %1702 = vmatpush1.bf16.msra.mxu0 %v3042_v25 }
 0x2fa   :  { %1703 = vmatprep.subr.bf16.mxu0 %v3050_v27 }
 0x2fd   :  { %1704 = vmatpush2.bf16.msra.mxu0 %v3048_v28 }
 0x2fe   :  { %1705 = vmatprep.subr.bf16.mxu0 %v3056_v30  ;;  %v3099_v30 = vld [vmem:[#allocation2 + $0xe8] ss:$16 sps:$4 sm:$0xff]  }
 0x301   :  { %1706 = vmatpush2.bf16.msra.mxu0 %v3054_v31  ;;  %v3104_v31 = vld [vmem:[#allocation2 + $0x2cc] ss:$16 sps:$4 sm:$0xff]  }
 0x302   :  { %1707 = vmatprep.subr.bf16.mxu0 %v3062_v34  ;;  %v3105_v34 = vld [vmem:[#allocation2 + $0xc8] ss:$16 sps:$4 sm:$0xff]  }
 0x305   :  { %1708 = vmatpush2.bf16.msra.mxu0 %v3060_v29  ;;  %v3113_v29 = vld [vmem:[#allocation2 + $0xac] ss:$16 sps:$4 sm:$0xff]  }
 0x306   :  { %1709 = vmatprep.subr.bf16.mxu0 %v3068_v38  ;;  %v3119_v38 = vld [vmem:[#allocation2 + $0x8c] ss:$16 sps:$4 sm:$0xff]  }
 0x309   :  { %1710 = vmatpush2.bf16.msra.mxu0 %v3066_v37  ;;  %v3111_v37 = vld [vmem:[#allocation2 + $0xa8] ss:$16 sps:$4 sm:$0xff]  }
 0x30a   :  { %1711 = vmatprep.subr.bf16.mxu0 %v3074_v41  ;;  %v3117_v41 = vld [vmem:[#allocation2 + $0x88] ss:$16 sps:$4 sm:$0xff]  }
 0x30d   :  { %1712 = vmatpush2.bf16.msra.mxu0 %v3072_v42  ;;  %v3125_v42 = vld [vmem:[#allocation2 + $0x6c] ss:$16 sps:$4 sm:$0xff]  }
 0x30e   :  { %1713 = vmatprep.subr.bf16.mxu0 %v3080_v45  ;;  %v3123_v45 = vld [vmem:[#allocation2 + $0x68] ss:$16 sps:$4 sm:$0xff]  }
 0x311   :  { %1714 = vmatpush2.bf16.msra.mxu0 %v3078_v46  ;;  %v3131_v46 = vld [vmem:[#allocation2 + $0x4c] ss:$16 sps:$4 sm:$0xff]  }
 0x312   :  { %1715 = vmatprep.subr.bf16.mxu0 %v3086_v49  ;;  %v3129_v49 = vld [vmem:[#allocation2 + $0x48] ss:$16 sps:$4 sm:$0xff]  }
 0x315   :  { %1716 = vmatpush2.bf16.msra.mxu0 %v3084_v50  ;;  %v3137_v50 = vld [vmem:[#allocation2 + $0x2c] ss:$16 sps:$4 sm:$0xff]  }
 0x316   :  { %1717 = vmatprep.subr.bf16.mxu0 %v3092_v54  ;;  %v3143_v54 = vld [vmem:[#allocation2 + $0xc] ss:$16 sps:$4 sm:$0xff]  }
 0x319   :  { %1718 = vmatpush2.bf16.msra.mxu0 %v3090_v53  ;;  %v3135_v53 = vld [vmem:[#allocation2 + $0x28] ss:$16 sps:$4 sm:$0xff]  }
 0x31a   :  { %1810 = vmatprep.subr.bf16.mxu0 %v3098_v57  ;;  %v3141_v57 = vld [vmem:[#allocation2 + $0x8] ss:$16 sps:$4 sm:$0xff]  }
 0x388   :  { %v747_v63 = vpop.f32.mrf.mxu0 }
 0x38a   :  { %v749_v2 = vpop.f32.mrf.mxu0 }
 0x38b   :  { %v799_v6 = vcombine.low %v747_v63, %v749_v2  ;;  %v3147_v63 = vld [vmem:[#allocation2 + $0x1e8] ss:$16 sps:$4 sm:$0xff]   ;;  %v3155_v2 = vld [vmem:[#allocation2 + $0x1cc] ss:$16 sps:$4 sm:$0xff]  }
 0x38c   :  { %v751_v8 = vpop.f32.mrf.mxu0 }
 0x38d   :  { %v807_v11 = vrot.slane %v799_v6, %v3516_v26  ;;  %v3150_v8 = vld [vmem:[#allocation2 + $0x388] ss:$16 sps:$4 sm:$0xff]   ;;  %v3161_v6 = vld [vmem:[#allocation2 + $0x1ac] ss:$16 sps:$4 sm:$0xff]  }
 0x38e   :  { %v752_v3 = vpop.f32.mrf.mxu0 }
 0x38f   :  { %v3158_v3 = vld [vmem:[#allocation2 + $0x36c] ss:$16 sps:$4 sm:$0xff]  }
 0x394   :  { %v788_v4 = vpop.f32.mrf.mxu0 }
 0x396   :  { %v790_v7 = vpop.f32.mrf.mxu0 }
 0x397   :  { %v800_v9 = vcombine.low %v788_v4, %v790_v7  ;;  %v3153_v4 = vld [vmem:[#allocation2 + $0x1c8] ss:$16 sps:$4 sm:$0xff]  }
 0x398   :  { %v792_v10 = vpop.f32.mrf.mxu0  ;;  %v3156_v7 = vld [vmem:[#allocation2 + $0x368] ss:$16 sps:$4 sm:$0xff]  }
 0x399   :  { %v814_v1 = vrot.slane %v800_v9, %v3516_v26  ;;  %v3164_v9 = vld [vmem:[#allocation2 + $0x34c] ss:$16 sps:$4 sm:$0xff]   ;;  %v3159_v10 = vld [vmem:[#allocation2 + $0x1a8] ss:$16 sps:$4 sm:$0xff]  }
 0x39a   :  { %v793_v5 = vpop.f32.mrf.mxu0 }
 0x39b   :  { %v815_v12 = vcombine.low %v807_v11, %v814_v1  ;;  %v3167_v11 = vld [vmem:[#allocation2 + $0x18c] ss:$16 sps:$4 sm:$0xff]   ;;  %v3162_v1 = vld [vmem:[#allocation2 + $0x348] ss:$16 sps:$4 sm:$0xff]  }
 0x39c   :  { %v3739_v15 = vpop.f32.mrf.mxu0  ;;  %v3170_v5 = vld [vmem:[#allocation2 + $0x32c] ss:$16 sps:$4 sm:$0xff]  }
 0x39d   :  { %v817_v16 = vmul.f32 %v815_v12, %v3691_v21  ;;  %v3165_v12 = vld [vmem:[#allocation2 + $0x188] ss:$16 sps:$4 sm:$0xff]  }
 0x39e   :  { %v3742_v13 = vpop.f32.mrf.mxu0 }
 0x39f   :  { %v819_v14 = vcombine.high %v817_v16, %v817_v16  ;;  %v826_v17 = vrot.slane %v817_v16, %v3516_v26  ;;  %v3173_v16 = vld [vmem:[#allocation2 + $0x16c] ss:$16 sps:$4 sm:$0xff]  }
 0x3a0   :  { %v1040_v0 = vpop.f32.mrf.mxu0 }
 0x3a1   :  { %v834_v18 = vcombine.high %v826_v17, %v826_v17  ;;  %v833_v19 = vrot.slane %v819_v14, %v3516_v26  ;;  %v3746_v27 = vpack.c.bf16 %v826_v17, %v826_v17  ;;  %v3110_v26 = vld [vmem:[#allocation2 + $0x2ac] ss:$16 sps:$4 sm:$0xff]   ;;  %v3168_v14 = vld [vmem:[#allocation2 + $0x328] ss:$16 sps:$4 sm:$0xff]  }
 0x3a2   :  { %v1041_v20 = vpop.f32.mrf.mxu0  ;;  %v3176_v17 = vld [vmem:[#allocation2 + $0x30c] ss:$16 sps:$4 sm:$0xff]   ;;  %v3171_v0 = vld [vmem:[#allocation2 + $0x168] ss:$16 sps:$4 sm:$0xff]  }
 0x3a3   :  { %v841_v23 = vpack.c.bf16 %v834_v18, %v834_v18  ;;  %v835_v25 = vcombine.high %v833_v19, %v833_v19  ;;  %v3749_v21 = vpack.c.bf16 %v833_v19, %v833_v19  ;;  %v3179_v18 = vld [vmem:[#allocation2 + $0x14c] ss:$16 sps:$4 sm:$0xff]   ;;  %v3174_v19 = vld [vmem:[#allocation2 + $0x308] ss:$16 sps:$4 sm:$0xff]  }
 0x3a4   :  { %v3188_v20 = vld [vmem:[%s4180_s7 + $0x74] ss:$8 sps:$4 sm:$0xff]  }
 0x3a5   :  { %1719 = vmatprep.mubr.bf16.mxu0 %v841_v23  ;;  %v843_v28 = vpack.c.bf16 %v835_v25, %v835_v25  ;;  %v3186_v25 = vld [vmem:[%s4180_s7 + $0x70] ss:$8 sps:$4 sm:$0xff]  }
 0x3a6   :  { %1720 = vmatmul.mubr.bf16.vlgmr.msra.gmra.mxu0 %v3746_v27 }
 0x3a7   :  { %1811 = vmatpush1.bf16.msra.mxu0 %v3096_v24  ;;  %2770 = vmatprep.mubr.msk.bf16.mxu1 %vm341_vm0, %v843_v28  ;;  %v3182_v24 = vld [vmem:[#allocation2 + $0x12c] ss:$16 sps:$4 sm:$0xff]  }
 0x3a8   :  { %2771 = vmatprep.mubr.msk.bf16.mxu0 %vm341_vm0, %v843_v28  ;;  %1761 = vmatmul.mubr.bf16.vlgmr.msra.gmra.mxu1 %v3749_v21  ;;  %v3191_v28 = vld [vmem:[%s4180_s7 + $0x64] ss:$8 sps:$4 sm:$0xff]  }
 0x3a9   :  { %1770 = vmatpush1.bf16.msra.mxu1 %v3099_v30  ;;  %1801 = vmatprep.mubr.bf16.mxu1 %v841_v23  ;;  %v3177_v23 = vld [vmem:[#allocation2 + $0x148] ss:$16 sps:$4 sm:$0xff]  }
 0x3aa   :  { %1812 = vmatprep.subr.bf16.mxu0 %v3104_v31  ;;  %1771 = vmatprep.subr.bf16.mxu1 %v3107_v32  ;;  %v3180_v30 = vld [vmem:[#allocation2 + $0x128] ss:$16 sps:$4 sm:$0xff]   ;;  %v3185_v31 = vld [vmem:[#allocation2 + $0x10c] ss:$16 sps:$4 sm:$0xff]  }
 0x3ab   :  { %1813 = vmatpush1.bf16.msra.mxu0 %v3102_v33  ;;  %v3189_v32 = vld [vmem:[%s4180_s7 + $0x60] ss:$8 sps:$4 sm:$0xff]   ;;  %v3194_v33 = vld [vmem:[%s4180_s7 + $0x54] ss:$8 sps:$4 sm:$0xff]  }
 0x3ac   :  { %1814 = vmatprep.subr.bf16.mxu0 %v3110_v26  ;;  %v3183_v26 = vld [vmem:[#allocation2 + $0x108] ss:$16 sps:$4 sm:$0xff]  }
 0x3ad   :  { %1772 = vmatpush1.bf16.msra.mxu1 %v3105_v34  ;;  %v3197_v34 = vld [vmem:[%s4180_s7 + $0x44] ss:$8 sps:$4 sm:$0xff]  }
 0x3ae   :  { %1773 = vmatprep.subr.bf16.mxu1 %v3113_v29  ;;  %v3195_v29 = vld [vmem:[%s4180_s7 + $0x40] ss:$8 sps:$4 sm:$0xff]  }
 0x3af   :  { %1815 = vmatpush1.bf16.msra.mxu0 %v3108_v35  ;;  %v3200_v35 = vld [vmem:[%s4180_s7 + $0x34] ss:$8 sps:$4 sm:$0xff]  }
 0x3b0   :  { %1816 = vmatprep.subr.bf16.mxu0 %v3116_v36  ;;  %v3198_v36 = vld [vmem:[%s4180_s7 + $0x30] ss:$8 sps:$4 sm:$0xff]  }
 0x3b1   :  { %1774 = vmatpush1.bf16.msra.mxu1 %v3111_v37  ;;  %v3203_v37 = vld [vmem:[%s4180_s7 + $0x24] ss:$8 sps:$4 sm:$0xff]  }
 0x3b2   :  { %1775 = vmatprep.subr.bf16.mxu1 %v3119_v38  ;;  %v3206_v38 = vld [vmem:[%s4180_s7 + $0x14] ss:$8 sps:$4 sm:$0xff]  }
 0x3b3   :  { %1817 = vmatpush1.bf16.msra.mxu0 %v3114_v39  ;;  %v3204_v39 = vld [vmem:[%s4180_s7 + $0x10] ss:$8 sps:$4 sm:$0xff]  }
 0x3b4   :  { %1818 = vmatprep.subr.bf16.mxu0 %v3122_v40  ;;  %v3209_v40 = vld [vmem:[%s4180_s7 + $0x4] ss:$8 sps:$4 sm:$0xff]  }
 0x3b5   :  { %1776 = vmatpush1.bf16.msra.mxu1 %v3117_v41  ;;  %v3234_v41 = vld [vmem:[%s4182_s9 + $0x70] ss:$8 sps:$4 sm:$0xff]  }
 0x3b6   :  { %1777 = vmatprep.subr.bf16.mxu1 %v3125_v42  ;;  %v3236_v42 = vld [vmem:[%s4182_s9 + $0x74] ss:$8 sps:$4 sm:$0xff]  }
 0x3b7   :  { %1819 = vmatpush1.bf16.msra.mxu0 %v3120_v43  ;;  %v3239_v43 = vld [vmem:[%s4182_s9 + $0x64] ss:$8 sps:$4 sm:$0xff]  }
 0x3b8   :  { %1820 = vmatprep.subr.bf16.mxu0 %v3128_v44  ;;  %v3207_v44 = vld [vmem:[%s4180_s7] ss:$8 sps:$4 sm:$0xff]  }
 0x3b9   :  { %1778 = vmatpush1.bf16.msra.mxu1 %v3123_v45  ;;  %v3237_v45 = vld [vmem:[%s4182_s9 + $0x60] ss:$8 sps:$4 sm:$0xff]  }
 0x3ba   :  { %1779 = vmatprep.subr.bf16.mxu1 %v3131_v46  ;;  %v3212_v46 = vld [vmem:[%s4180_s7 + $0xf4] ss:$8 sps:$4 sm:$0xff]  }
 0x3bb   :  { %1821 = vmatpush1.bf16.msra.mxu0 %v3126_v47  ;;  %v3242_v47 = vld [vmem:[%s4182_s9 + $0x54] ss:$8 sps:$4 sm:$0xff]  }
 0x3bc   :  { %1822 = vmatprep.subr.bf16.mxu0 %v3134_v48  ;;  %v3210_v48 = vld [vmem:[%s4180_s7 + $0xf0] ss:$8 sps:$4 sm:$0xff]  }
 0x3bd   :  { %1780 = vmatpush1.bf16.msra.mxu1 %v3129_v49  ;;  %v3240_v49 = vld [vmem:[%s4182_s9 + $0x50] ss:$8 sps:$4 sm:$0xff]  }
 0x3be   :  { %1781 = vmatprep.subr.bf16.mxu1 %v3137_v50  ;;  %v3215_v50 = vld [vmem:[%s4180_s7 + $0xe4] ss:$8 sps:$4 sm:$0xff]  }
 0x3bf   :  { %1823 = vmatpush1.bf16.msra.mxu0 %v3132_v51  ;;  %v3245_v51 = vld [vmem:[%s4182_s9 + $0x44] ss:$8 sps:$4 sm:$0xff]  }
 0x3c0   :  { %1824 = vmatprep.subr.bf16.mxu0 %v3140_v52  ;;  %v3213_v52 = vld [vmem:[%s4180_s7 + $0xe0] ss:$8 sps:$4 sm:$0xff]  }
 0x3c1   :  { %1782 = vmatpush1.bf16.msra.mxu1 %v3135_v53  ;;  %v3243_v53 = vld [vmem:[%s4182_s9 + $0x40] ss:$8 sps:$4 sm:$0xff]  }
 0x3c2   :  { %1783 = vmatprep.subr.bf16.mxu1 %v3143_v54  ;;  %v3218_v54 = vld [vmem:[%s4180_s7 + $0xd4] ss:$8 sps:$4 sm:$0xff]  }
 0x3c3   :  { %1825 = vmatpush1.bf16.msra.mxu0 %v3138_v55  ;;  %v3248_v55 = vld [vmem:[%s4182_s9 + $0x34] ss:$8 sps:$4 sm:$0xff]  }
 0x3c4   :  { %1830 = vmatprep.subr.bf16.mxu0 %v3146_v56  ;;  %v3216_v56 = vld [vmem:[%s4180_s7 + $0xd0] ss:$8 sps:$4 sm:$0xff]  }
 0x3c5   :  { %1784 = vmatpush1.bf16.msra.mxu1 %v3141_v57  ;;  %v3246_v57 = vld [vmem:[%s4182_s9 + $0x30] ss:$8 sps:$4 sm:$0xff]  }
 0x3c6   :  { %1785 = vmatprep.subr.bf16.mxu1 %v3149_v58  ;;  %v3221_v58 = vld [vmem:[%s4180_s7 + $0xc4] ss:$8 sps:$4 sm:$0xff]  }
 0x3c7   :  { %1831 = vmatpush2.bf16.msra.mxu0 %v3144_v61  ;;  %v3251_v61 = vld [vmem:[%s4182_s9 + $0x24] ss:$8 sps:$4 sm:$0xff]  }
 0x3c8   :  { %1832 = vmatprep.subr.bf16.mxu0 %v3152_v62  ;;  %v3219_v62 = vld [vmem:[%s4180_s7 + $0xc0] ss:$8 sps:$4 sm:$0xff]  }
 0x3c9   :  { %1786 = vmatpush2.bf16.msra.mxu1 %v3147_v63  ;;  %v3249_v63 = vld [vmem:[%s4182_s9 + $0x20] ss:$8 sps:$4 sm:$0xff]  }
 0x3ca   :  { %1787 = vmatprep.subr.bf16.mxu1 %v3155_v2  ;;  %v3224_v2 = vld [vmem:[%s4180_s7 + $0xb4] ss:$8 sps:$4 sm:$0xff]  }
 0x3cb   :  { %1833 = vmatpush2.bf16.msra.mxu0 %v3150_v8  ;;  %v3254_v8 = vld [vmem:[%s4182_s9 + $0x14] ss:$8 sps:$4 sm:$0xff]  }
 0x3cc   :  { %1834 = vmatprep.subr.bf16.mxu0 %v3158_v3  ;;  %v3222_v3 = vld [vmem:[%s4180_s7 + $0xb0] ss:$8 sps:$4 sm:$0xff]  }
 0x3cd   :  { %1788 = vmatpush2.bf16.msra.mxu1 %v3153_v4  ;;  %v3252_v4 = vld [vmem:[%s4182_s9 + $0x10] ss:$8 sps:$4 sm:$0xff]  }
 0x3ce   :  { %1789 = vmatprep.subr.bf16.mxu1 %v3161_v6  ;;  %v3227_v6 = vld [vmem:[%s4180_s7 + $0xa4] ss:$8 sps:$4 sm:$0xff]  }
 0x3cf   :  { %1835 = vmatpush2.bf16.msra.mxu0 %v3156_v7  ;;  %v3257_v7 = vld [vmem:[%s4182_s9 + $0x4] ss:$8 sps:$4 sm:$0xff]  }
 0x3d0   :  { %1836 = vmatprep.subr.bf16.mxu0 %v3164_v9  ;;  %v3225_v9 = vld [vmem:[%s4180_s7 + $0xa0] ss:$8 sps:$4 sm:$0xff]  }
 0x3d1   :  { %1790 = vmatpush2.bf16.msra.mxu1 %v3159_v10  ;;  %v3255_v10 = vld [vmem:[%s4182_s9] ss:$8 sps:$4 sm:$0xff]  }
 0x3d2   :  { %1791 = vmatprep.subr.bf16.mxu1 %v3167_v11  ;;  %v3230_v11 = vld [vmem:[%s4180_s7 + $0x94] ss:$8 sps:$4 sm:$0xff]  }
 0x3d3   :  { %1837 = vmatpush2.bf16.msra.mxu0 %v3162_v1  ;;  %v3260_v1 = vld [vmem:[%s4182_s9 + $0xf4] ss:$8 sps:$4 sm:$0xff]  }
 0x3d4   :  { %1838 = vmatprep.subr.bf16.mxu0 %v3170_v5  ;;  %v3228_v5 = vld [vmem:[%s4180_s7 + $0x90] ss:$8 sps:$4 sm:$0xff]  }
 0x3d5   :  { %1792 = vmatpush2.bf16.msra.mxu1 %v3165_v12  ;;  %v3258_v12 = vld [vmem:[%s4182_s9 + $0xf0] ss:$8 sps:$4 sm:$0xff]  }
 0x3d6   :  { %1793 = vmatprep.subr.bf16.mxu1 %v3173_v16  ;;  %v3233_v16 = vld [vmem:[%s4180_s7 + $0x84] ss:$8 sps:$4 sm:$0xff]  }
 0x3d7   :  { %1839 = vmatpush2.bf16.msra.mxu0 %v3168_v14  ;;  %v3263_v14 = vld [vmem:[%s4182_s9 + $0xe4] ss:$8 sps:$4 sm:$0xff]  }
 0x3d8   :  { %1840 = vmatprep.subr.bf16.mxu0 %v3176_v17  ;;  %v3231_v17 = vld [vmem:[%s4180_s7 + $0x80] ss:$8 sps:$4 sm:$0xff]  }
 0x3d9   :  { %1794 = vmatpush2.bf16.msra.mxu1 %v3171_v0  ;;  %v3261_v0 = vld [vmem:[%s4182_s9 + $0xe0] ss:$8 sps:$4 sm:$0xff]  }
 0x3da   :  { %1795 = vmatprep.subr.bf16.mxu1 %v3179_v18  ;;  %v3266_v18 = vld [vmem:[%s4182_s9 + $0xd4] ss:$8 sps:$4 sm:$0xff]  }
 0x3db   :  { %1841 = vmatpush2.bf16.msra.mxu0 %v3174_v19  ;;  %v3264_v19 = vld [vmem:[%s4182_s9 + $0xd0] ss:$8 sps:$4 sm:$0xff]  }
 0x3dc   :  { %2087 = vmatprep.subr.bf16.mxu0 %v3188_v20  ;;  %v3269_v20 = vld [vmem:[%s4182_s9 + $0xc4] ss:$8 sps:$4 sm:$0xff]  }
 0x3dd   :  { %1796 = vmatpush2.bf16.msra.mxu1 %v3177_v23  ;;  %v3267_v23 = vld [vmem:[%s4182_s9 + $0xc0] ss:$8 sps:$4 sm:$0xff]  }
 0x3de   :  { %1843 = vmatmul.mubr.bf16.vlgmr.msra.gmra.mxu0 %v3749_v21  ;;  %1797 = vmatprep.subr.bf16.mxu1 %v3182_v24  ;;  %v3192_v21 = vld [vmem:[%s4180_s7 + $0x50] ss:$8 sps:$4 sm:$0xff]  }
 0x3df   :  { %2088 = vmatpush1.bf16.msra.mxu0 %v3186_v25  ;;  %v3270_v24 = vld [vmem:[%s4182_s9 + $0xb0] ss:$8 sps:$4 sm:$0xff]   ;;  %v3272_v25 = vld [vmem:[%s4182_s9 + $0xb4] ss:$8 sps:$4 sm:$0xff]  }
 0x3e0   :  { %2089 = vmatprep.subr.bf16.mxu0 %v3191_v28  ;;  %v3275_v28 = vld [vmem:[%s4182_s9 + $0xa4] ss:$8 sps:$4 sm:$0xff]  }
 0x3e1   :  { %1798 = vmatpush2.bf16.msra.mxu1 %v3180_v30  ;;  %v3273_v30 = vld [vmem:[%s4182_s9 + $0xa0] ss:$8 sps:$4 sm:$0xff]  }
 0x3e2   :  { %1799 = vmatprep.subr.bf16.mxu1 %v3185_v31  ;;  %v3278_v31 = vld [vmem:[%s4182_s9 + $0x94] ss:$8 sps:$4 sm:$0xff]  }
 0x3e3   :  { %2090 = vmatpush1.bf16.msra.mxu0 %v3189_v32  ;;  %v3276_v32 = vld [vmem:[%s4182_s9 + $0x90] ss:$8 sps:$4 sm:$0xff]  }
 0x3e4   :  { %2091 = vmatprep.subr.bf16.mxu0 %v3194_v33  ;;  %v3281_v33 = vld [vmem:[%s4182_s9 + $0x84] ss:$8 sps:$4 sm:$0xff]  }
 0x3e5   :  { %1800 = vmatpush2.bf16.msra.mxu1 %v3183_v26  ;;  %v3279_v26 = vld [vmem:[%s4182_s9 + $0x80] ss:$8 sps:$4 sm:$0xff]  }
 0x3e6   :  { %2336 = vmatprep.subr.bf16.mxu1 %v3236_v42 }
 0x3e7   :  { %2092 = vmatpush1.bf16.msra.mxu0 %v3192_v21  ;;  %v2410_v21 = vld [vmem:[%s4184_s11 + $0xf8] sm:$0xff] }
 0x3e8   :  { %1802 = vmatmul.mubr.bf16.vlgmr.msra.gmra.mxu1 %v3746_v27  ;;  %2093 = vmatprep.subr.bf16.mxu0 %v3197_v34  ;;  %v3201_v27 = vld [vmem:[%s4180_s7 + $0x20] ss:$8 sps:$4 sm:$0xff]   ;;  %v3952_v34 = vsub.s32 0, %v3494_v22 }
 0x3e9   :  { %2337 = vmatpush1.bf16.msra.mxu1 %v3234_v41 }
 0x3ea   :  { %2338 = vmatprep.subr.bf16.mxu1 %v3239_v43 }
 0x3eb   :  { %2094 = vmatpush1.bf16.msra.mxu0 %v3195_v29  ;;  %v1851_v29 = vld [vmem:[%s4179_s6] sm:$0xf] }
 0x3ec   :  { %2095 = vmatprep.subr.bf16.mxu0 %v3200_v35  ;;  %v3958_v35 = vsub.s32 1, %v3494_v22 }
 0x3ed   :  { %2339 = vmatpush1.bf16.msra.mxu1 %v3237_v45 }
 0x3ee   :  { %2340 = vmatprep.subr.bf16.mxu1 %v3242_v47  ;;  %v1860_v42 = vrot.slane %v1851_v29, %v3958_v35 }
 0x3ef   :  { %2096 = vmatpush1.bf16.msra.mxu0 %v3198_v36 }
 0x3f0   :  { %2097 = vmatprep.subr.bf16.mxu0 %v3203_v37 }
 0x3f1   :  { %2341 = vmatpush1.bf16.msra.mxu1 %v3240_v49 }
 0x3f2   :  { %2342 = vmatprep.subr.bf16.mxu1 %v3245_v51 }
 0x3f3   :  { %2098 = vmatpush1.bf16.msra.mxu0 %v3201_v27  ;;  %v1856_v27 = vrot.slane %v1851_v29, %v3952_v34 }
 0x3f4   :  { %2099 = vmatprep.subr.bf16.mxu0 %v3206_v38 }
 0x3f5   :  { %2343 = vmatpush1.bf16.msra.mxu1 %v3243_v53 }
 0x3f6   :  { %2344 = vmatprep.subr.bf16.mxu1 %v3248_v55 }
 0x3f7   :  { %2100 = vmatpush1.bf16.msra.mxu0 %v3204_v39 }
 0x3f8   :  { %2101 = vmatprep.subr.bf16.mxu0 %v3209_v40 }
 0x3f9   :  { %2345 = vmatpush1.bf16.msra.mxu1 %v3246_v57  ;;  %v1863_v57 = vsub.s32 2, %v3494_v22 }
 0x3fa   :  { %2346 = vmatprep.subr.bf16.mxu1 %v3251_v61 }
 0x3fb   :  { %2102 = vmatpush1.bf16.msra.mxu0 %v3207_v44 }
 0x3fc   :  { %2103 = vmatprep.subr.bf16.mxu0 %v3212_v46 }
 0x3fd   :  { %2347 = vmatpush1.bf16.msra.mxu1 %v3249_v63  ;;  %v1864_v63 = vrot.slane %v1851_v29, %v1863_v57  ;;  %v2397_v57 = vld [vmem:[%s4184_s11 + $0x90] sm:$0xff] }
 0x3fe   :  { %2348 = vmatprep.subr.bf16.mxu1 %v3254_v8 }
 0x3ff   :  { %2104 = vmatpush2.bf16.msra.mxu0 %v3210_v48 }
 0x400   :  { %2105 = vmatprep.subr.bf16.mxu0 %v3215_v50 }
 0x401   :  { %2349 = vmatpush1.bf16.msra.mxu1 %v3252_v4 }
 0x402   :  { %2350 = vmatprep.subr.bf16.mxu1 %v3257_v7 }
 0x403   :  { %2106 = vmatpush2.bf16.msra.mxu0 %v3213_v52 }
 0x404   :  { %2107 = vmatprep.subr.bf16.mxu0 %v3218_v54 }
 0x405   :  { %2351 = vmatpush1.bf16.msra.mxu1 %v3255_v10 }
 0x406   :  { %2352 = vmatprep.subr.bf16.mxu1 %v3260_v1 }
 0x407   :  { %2108 = vmatpush2.bf16.msra.mxu0 %v3216_v56 }
 0x408   :  { %2109 = vmatprep.subr.bf16.mxu0 %v3221_v58  ;;  %v1867_v58 = vsub.s32 3, %v3494_v22  ;;  %v2394_v22 = vld [vmem:[%s4184_s11 + $0x78] sm:$0xff] }
 0x409   :  { %2353 = vmatpush2.bf16.msra.mxu1 %v3258_v12 }
 0x40a   :  { %2354 = vmatprep.subr.bf16.mxu1 %v3263_v14  ;;  %v1868_v4 = vrot.slane %v1851_v29, %v1867_v58  ;;  %v2408_v14 = vld [vmem:[%s4184_s11 + $0xe8] sm:$0xff]  ;;  %v2439_v29 = vld [vmem:[%s4185_s12 + $0xe0] sm:$0xff]  ;;  %v2417_v58 = vld [vmem:[%s4185_s12 + $0x30] sm:$0xff] }
 0x40b   :  { %2110 = vmatpush2.bf16.msra.mxu0 %v3219_v62 }
 0x40c   :  { %2111 = vmatprep.subr.bf16.mxu0 %v3224_v2 }
 0x40d   :  { %2355 = vmatpush2.bf16.msra.mxu1 %v3261_v0  ;;  %v2407_v0 = vld [vmem:[%s4184_s11 + $0xe0] sm:$0xff] }
 0x40e   :  { %2356 = vmatprep.subr.bf16.mxu1 %v3266_v18  ;;  %v2391_v18 = vld [vmem:[%s4184_s11 + $0x60] sm:$0xff] }
 0x40f   :  { %2112 = vmatpush2.bf16.msra.mxu0 %v3222_v3 }
 0x410   :  { %2113 = vmatprep.subr.bf16.mxu0 %v3227_v6 }
 0x411   :  { %2357 = vmatpush2.bf16.msra.mxu1 %v3264_v19  ;;  %v2406_v19 = vld [vmem:[%s4184_s11 + $0xd8] sm:$0xff] }
 0x412   :  { %2358 = vmatprep.subr.bf16.mxu1 %v3269_v20  ;;  %v2390_v20 = vld [vmem:[%s4184_s11 + $0x58] sm:$0xff] }
 0x413   :  { %2114 = vmatpush2.bf16.msra.mxu0 %v3225_v9 }
 0x414   :  { %2115 = vmatprep.subr.bf16.mxu0 %v3230_v11 }
 0x415   :  { %2359 = vmatpush2.bf16.msra.mxu1 %v3267_v23  ;;  %v2442_v23 = vld [vmem:[%s4185_s12 + $0xf8] sm:$0xff] }
 0x416   :  { %2360 = vmatprep.subr.bf16.mxu1 %v3272_v25  ;;  %v2441_v25 = vld [vmem:[%s4185_s12 + $0xf0] sm:$0xff] }
 0x417   :  { %2116 = vmatpush2.bf16.msra.mxu0 %v3228_v5 }
 0x418   :  { %2117 = vmatprep.subr.bf16.mxu0 %v3233_v16 }
 0x419   :  { %2361 = vmatpush2.bf16.msra.mxu1 %v3270_v24  ;;  %v2426_v24 = vld [vmem:[%s4185_s12 + $0x78] sm:$0xff] }
 0x41a   :  { %2362 = vmatprep.subr.bf16.mxu1 %v3275_v28  ;;  %v2405_v28 = vld [vmem:[%s4184_s11 + $0xd0] sm:$0xff] }
 0x41b   :  { %2118 = vmatpush2.bf16.msra.mxu0 %v3231_v17  ;;  %v2392_v17 = vld [vmem:[%s4184_s11 + $0x68] sm:$0xff] }
 0x41c   :  { %2881 = vmatprep.subr.mxu0 %v2442_v23 }
 0x41d   :  { %2363 = vmatpush2.bf16.msra.mxu1 %v3273_v30  ;;  %v2425_v30 = vld [vmem:[%s4185_s12 + $0x70] sm:$0xff] }
 0x41e   :  { %2364 = vmatprep.subr.bf16.mxu1 %v3278_v31  ;;  %v2389_v31 = vld [vmem:[%s4184_s11 + $0x50] sm:$0xff] }
 0x421   :  { %2365 = vmatpush2.bf16.msra.mxu1 %v3276_v32  ;;  %v2440_v32 = vld [vmem:[%s4185_s12 + $0xe8] sm:$0xff] }
 0x422   :  { %2366 = vmatprep.subr.bf16.mxu1 %v3281_v33  ;;  %v2404_v33 = vld [vmem:[%s4184_s11 + $0xc8] sm:$0xff] }
 0x425   :  { %2367 = vmatpush2.bf16.msra.mxu1 %v3279_v26  ;;  %v2424_v26 = vld [vmem:[%s4185_s12 + $0x68] sm:$0xff] }
 0x426   :  { %2916 = vmatprep.subr.mxu1 %v2410_v21  ;;  %v2388_v21 = vld [vmem:[%s4184_s11 + $0x48] sm:$0xff] }
 0x466   :  { %v1721_v36 = vpop.f32.mrf.mxu0 }
 0x467   :  { %v1722_v37 = vadd.f32 %v1721_v36, %v3739_v15  ;;  %v2403_v36 = vld [vmem:[%s4184_s11 + $0xc0] sm:$0xff] }
 0x468   :  { %v1723_v38 = vpop.f32.mrf.mxu0  ;;  %v1762_v39 = vpop.f32.mrf.mxu1 }
 0x469   :  { %v1724_v40 = vadd.f32 %v1723_v38, %v3742_v13  ;;  %v1763_v41 = vadd.f32 %v1762_v39, %v1722_v37  ;;  %v2423_v37 = vld [vmem:[%s4185_s12 + $0x60] sm:$0xff]  ;;  %v2438_v38 = vld [vmem:[%s4185_s12 + $0xd8] sm:$0xff] }
 0x46a   :  { %v1725_v43 = vpop.f32.mrf.mxu0  ;;  %v1764_v44 = vpop.f32.mrf.mxu1  ;;  %v2402_v39 = vld [vmem:[%s4184_s11 + $0xb8] sm:$0xff] }
 0x46b   :  { %v1873_v45 = vadd.f32 %v1856_v27, %v1763_v41  ;;  %v1765_v46 = vadd.f32 %v1764_v44, %v1724_v40  ;;  %v2387_v27 = vld [vmem:[%s4184_s11 + $0x40] sm:$0xff]  ;;  %v2422_v40 = vld [vmem:[%s4185_s12 + $0x58] sm:$0xff]  ;;  %v2401_v43 = vld [vmem:[%s4184_s11 + $0xb0] sm:$0xff] }
 0x46c   :  { %v1726_v47 = vpop.f32.mrf.mxu0  ;;  %v1766_v48 = vpop.f32.mrf.mxu1  ;;  %v2386_v41 = vld [vmem:[%s4184_s11 + $0x38] sm:$0xff]  ;;  %v2421_v44 = vld [vmem:[%s4185_s12 + $0x50] sm:$0xff] }
 0x46d   :  { %v1874_v49 = vadd.f32 %v1860_v42, %v1765_v46  ;;  %v1877_v50 = vmax.f32 %v1873_v45, 0.0  ;;  %v2437_v42 = vld [vmem:[%s4185_s12 + $0xd0] sm:$0xff]  ;;  %v2436_v46 = vld [vmem:[%s4185_s12 + $0xc8] sm:$0xff] }
 0x46e   :  { %v1767_v51 = vpop.f32.mrf.mxu1  ;;  %v2385_v45 = vld [vmem:[%s4184_s11 + $0x30] sm:$0xff]  ;;  %v2400_v47 = vld [vmem:[%s4184_s11 + $0xa8] sm:$0xff] }
 0x46f   :  { %v1878_v52 = vmax.f32 %v1874_v49, 0.0  ;;  %v1881_v53 = vpack.c.bf16 %v1877_v50, %v1877_v50  ;;  %v2420_v48 = vld [vmem:[%s4185_s12 + $0x48] sm:$0xff]  ;;  %v2435_v50 = vld [vmem:[%s4185_s12 + $0xc0] sm:$0xff] }
 0x470   :  { %v2384_v49 = vld [vmem:[%s4184_s11 + $0x28] sm:$0xff]  ;;  %v2399_v51 = vld [vmem:[%s4184_s11 + $0xa0] sm:$0xff] }
 0x471   :  { %v1882_v15 = vpack.c.bf16 %v1878_v52, %v1878_v52  ;;  %v2419_v52 = vld [vmem:[%s4185_s12 + $0x40] sm:$0xff] }
 0x473   :  { %2119 = vmatprep.mubr.bf16.mxu0 %v1882_v15  ;;  %v2383_v15 = vld [vmem:[%s4184_s11 + $0x20] sm:$0xff] }
 0x474   :  { %2120 = vmatmul.mubr.bf16.vlgmr.msra.gmra.mxu0 %v1881_v53  ;;  %v2434_v53 = vld [vmem:[%s4185_s12 + $0xb8] sm:$0xff] }
 0x475   :  { %2882 = vmatpush3.msra.mxu0 %v2426_v24 }
 0x476   :  { %2883 = vmatprep.subr.mxu0 %v2441_v25 }
 0x477   :  { %2884 = vmatpush3.msra.mxu0 %v2425_v30 }
 0x478   :  { %2885 = vmatprep.subr.mxu0 %v2440_v32 }
 0x479   :  { %2886 = vmatpush3.msra.mxu0 %v2424_v26 }
 0x47a   :  { %2887 = vmatprep.subr.mxu0 %v2439_v29 }
 0x47b   :  { %2888 = vmatpush3.msra.mxu0 %v2423_v37 }
 0x47c   :  { %2889 = vmatprep.subr.mxu0 %v2438_v38 }
 0x47d   :  { %2890 = vmatpush3.msra.mxu0 %v2422_v40 }
 0x47e   :  { %2891 = vmatprep.subr.mxu0 %v2437_v42 }
 0x47f   :  { %2892 = vmatpush3.msra.mxu0 %v2421_v44 }
 0x480   :  { %2893 = vmatprep.subr.mxu0 %v2436_v46 }
 0x481   :  { %2894 = vmatpush3.msra.mxu0 %v2420_v48 }
 0x482   :  { %2895 = vmatprep.subr.mxu0 %v2435_v50 }
 0x483   :  { %2896 = vmatpush3.msra.mxu0 %v2419_v52 }
 0x484   :  { %2897 = vmatprep.subr.mxu0 %v2434_v53 }
 0x49e   :  { %v1844_v54 = vpop.f32.mrf.mxu0 }
 0x4a0   :  { %v1846_v55 = vpop.f32.mrf.mxu0 }
 0x4a2   :  { %v1848_v13 = vpop.f32.mrf.mxu0 }
 0x4a3   :  { %v2382_v13 = vld [vmem:[%s4184_s11 + $0x18] sm:$0xff] }
 0x4a4   :  { %v1849_v56 = vpop.f32.mrf.mxu0 }
 0x4a5   :  { %v2433_v56 = vld [vmem:[%s4185_s12 + $0xb0] sm:$0xff] }
 0x4a8   :  { %v1803_v61 = vpop.f32.mrf.mxu1 }
 0x4a9   :  { %v1804_v62 = vadd.f32 %v1803_v61, %v3733_v59  ;;  %v2409_v59 = vld [vmem:[%s4184_s11 + $0xf0] sm:$0xff] }
 0x4aa   :  { %v1805_v2 = vpop.f32.mrf.mxu1  ;;  %v2381_v61 = vld [vmem:[%s4184_s11 + $0x10] sm:$0xff] }
 0x4ab   :  { %v1845_v8 = vadd.f32 %v1844_v54, %v1804_v62  ;;  %v1806_v3 = vadd.f32 %v1805_v2, %v3735_v60  ;;  %v2393_v60 = vld [vmem:[%s4184_s11 + $0x70] sm:$0xff]  ;;  %v2398_v54 = vld [vmem:[%s4184_s11 + $0x98] sm:$0xff]  ;;  %v2432_v62 = vld [vmem:[%s4185_s12 + $0xa8] sm:$0xff] }
 0x4ac   :  { %v1807_v6 = vpop.f32.mrf.mxu1  ;;  %v2416_v2 = vld [vmem:[%s4185_s12 + $0x28] sm:$0xff] }
 0x4ad   :  { %v1875_v7 = vadd.f32 %v1864_v63, %v1845_v8  ;;  %v1847_v9 = vadd.f32 %v1846_v55, %v1806_v3  ;;  %v2418_v55 = vld [vmem:[%s4185_s12 + $0x38] sm:$0xff]  ;;  %v2396_v63 = vld [vmem:[%s4184_s11 + $0x88] sm:$0xff]  ;;  %v2431_v3 = vld [vmem:[%s4185_s12 + $0xa0] sm:$0xff] }
 0x4ae   :  { %v1808_v10 = vpop.f32.mrf.mxu1  ;;  %2898 = vmatpush3.msra.mxu0 %v2418_v55  ;;  %v2380_v8 = vld [vmem:[%s4184_s11 + $0x8] sm:$0xff]  ;;  %v2415_v6 = vld [vmem:[%s4185_s12 + $0x20] sm:$0xff] }
 0x4af   :  { %v1876_v11 = vadd.f32 %v1868_v4, %v1847_v9  ;;  %v1879_v1 = vmax.f32 %v1875_v7, 0.0  ;;  %2899 = vmatprep.subr.mxu0 %v2433_v56  ;;  %v2395_v4 = vld [vmem:[%s4184_s11 + $0x80] sm:$0xff]  ;;  %v2430_v9 = vld [vmem:[%s4185_s12 + $0x98] sm:$0xff] }
 0x4b0   :  { %2900 = vmatpush3.msra.mxu0 %v2417_v58  ;;  %v2379_v7 = vld [vmem:[%s4184_s11] sm:$0xff]  ;;  %v2414_v10 = vld [vmem:[%s4185_s12 + $0x18] sm:$0xff] }
 0x4b1   :  { %v1880_v5 = vmax.f32 %v1876_v11, 0.0  ;;  %v2130_v16 = vpack.c.bf16 %v1879_v1, %v1879_v1  ;;  %2901 = vmatprep.subr.mxu0 %v2432_v62  ;;  %v2429_v11 = vld [vmem:[%s4185_s12 + $0x90] sm:$0xff] }
 0x4b2   :  { %2902 = vmatpush3.msra.mxu0 %v2416_v2  ;;  %v2413_v1 = vld [vmem:[%s4185_s12 + $0x10] sm:$0xff] }
 0x4b3   :  { %v2131_v12 = vpack.c.bf16 %v1880_v5, %v1880_v5  ;;  %2903 = vmatprep.subr.mxu0 %v2431_v3  ;;  %v2428_v5 = vld [vmem:[%s4185_s12 + $0x88] sm:$0xff] }
 0x4b4   :  { %2904 = vmatpush3.msra.mxu0 %v2415_v6 }
 0x4b5   :  { %2368 = vmatprep.mubr.bf16.mxu1 %v2131_v12  ;;  %2905 = vmatprep.subr.mxu0 %v2430_v9  ;;  %v2412_v12 = vld [vmem:[%s4185_s12 + $0x8] sm:$0xff] }
 0x4b6   :  { %2369 = vmatmul.mubr.bf16.vlgmr.msra.gmra.mxu1 %v2130_v16  ;;  %2906 = vmatpush3.msra.mxu0 %v2414_v10  ;;  %v2427_v16 = vld [vmem:[%s4185_s12 + $0x80] sm:$0xff] }
 0x4b7   :  { %2917 = vmatpush3.msra.mxu1 %v2394_v22  ;;  %2907 = vmatprep.subr.mxu0 %v2429_v11  ;;  %v2411_v22 = vld [vmem:[%s4185_s12] sm:$0xff] }
 0x4b8   :  { %2918 = vmatprep.subr.mxu1 %v2409_v59  ;;  %2908 = vmatpush3.msra.mxu0 %v2413_v1  ;;  %v1915_v59 = vld [vmem:[%s4181_s8] sm:$0x3] }
 0x4b9   :  { %2919 = vmatpush3.msra.mxu1 %v2393_v60  ;;  %2909 = vmatprep.subr.mxu0 %v2428_v5  ;;  %v1920_v60 = vrot.slane %v1915_v59, %v3952_v34 }
 0x4ba   :  { %2920 = vmatprep.subr.mxu1 %v2408_v14  ;;  %2910 = vmatpush3.msra.mxu0 %v2412_v12  ;;  %v1924_v14 = vrot.slane %v1915_v59, %v3958_v35 }
 0x4bb   :  { %2921 = vmatpush3.msra.mxu1 %v2392_v17  ;;  %2911 = vmatprep.subr.mxu0 %v2427_v16 }
 0x4bc   :  { %2922 = vmatprep.subr.mxu1 %v2407_v0  ;;  %2912 = vmatpush3.msra.mxu0 %v2411_v22 }
 0x4bd   :  { %2923 = vmatpush3.msra.mxu1 %v2391_v18 }
 0x4be   :  { %2924 = vmatprep.subr.mxu1 %v2406_v19 }
 0x4bf   :  { %2925 = vmatpush3.msra.mxu1 %v2390_v20 }
 0x4c0   :  { %2926 = vmatprep.subr.mxu1 %v2405_v28  ;;  %v2164_v28 = vld [vmem:[%s4183_s10] sm:$0x3] }
 0x4c1   :  { %2927 = vmatpush3.msra.mxu1 %v2389_v31  ;;  %v2169_v30 = vrot.slane %v2164_v28, %v3952_v34  ;;  %v2173_v31 = vrot.slane %v2164_v28, %v3958_v35  ;;  %v2836_v34 = vld [vmem:[%s4186_s13] ss:$0 sm:$0xff] }
 0x4c2   :  { %2928 = vmatprep.subr.mxu1 %v2404_v33 }
 0x4c3   :  { %2929 = vmatpush3.msra.mxu1 %v2388_v21 }
 0x4c4   :  { %2930 = vmatprep.subr.mxu1 %v2403_v36 }
 0x4c5   :  { %2931 = vmatpush3.msra.mxu1 %v2387_v27 }
 0x4c6   :  { %2932 = vmatprep.subr.mxu1 %v2402_v39 }
 0x4c7   :  { %2933 = vmatpush3.msra.mxu1 %v2386_v41 }
 0x4c8   :  { %2934 = vmatprep.subr.mxu1 %v2401_v43 }
 0x4c9   :  { %2935 = vmatpush3.msra.mxu1 %v2385_v45 }
 0x4ca   :  { %2936 = vmatprep.subr.mxu1 %v2400_v47 }
 0x4cb   :  { %2937 = vmatpush3.msra.mxu1 %v2384_v49 }
 0x4cc   :  { %2938 = vmatprep.subr.mxu1 %v2399_v51 }
 0x4cd   :  { %2939 = vmatpush3.msra.mxu1 %v2383_v15 }
 0x4ce   :  { %2940 = vmatprep.subr.mxu1 %v2398_v54 }
 0x4cf   :  { %2941 = vmatpush3.msra.mxu1 %v2382_v13 }
 0x4d0   :  { %2942 = vmatprep.subr.mxu1 %v2397_v57 }
 0x4d1   :  { %2943 = vmatpush3.msra.mxu1 %v2381_v61 }
 0x4d2   :  { %2944 = vmatprep.subr.mxu1 %v2396_v63 }
 0x4d3   :  { %2945 = vmatpush3.msra.mxu1 %v2380_v8 }
 0x4d4   :  { %2946 = vmatprep.subr.mxu1 %v2395_v4 }
 0x4d5   :  { %2947 = vmatpush3.msra.mxu1 %v2379_v7 }
 0x534   :  { %v2121_v17 = vpop.f32.mrf.mxu0 }
 0x535   :  { %v2122_v0 = vadd.f32 %v2121_v17, %v1920_v60 }
 0x536   :  { %v2123_v18 = vpop.f32.mrf.mxu0 }
 0x537   :  { %v2124_v19 = vadd.f32 %v2123_v18, %v1924_v14  ;;  %v2128_v24 = vmax.f32 %v2122_v0, 0.0 }
 0x538   :  { %v2125_v20 = vpop.f32.mrf.mxu0 }
 0x539   :  { %v2129_v23 = vmax.f32 %v2124_v19, 0.0 }
 0x53a   :  { %v2126_v25 = vpop.f32.mrf.mxu0 }
 0x53b   :  { %2577 = vmatprep.mubr.f32.mxu1 %v2129_v23 }
 0x53c   :  { %2578 = vmatmul.mubr.f32.vlgmr.msra.gmra.mxu1 %v2128_v24 }
 0x576   :  { %v2370_v32 = vpop.f32.mrf.mxu1 }
 0x577   :  { %v2371_v33 = vadd.f32 %v2370_v32, %v2169_v30 }
 0x578   :  { %v2372_v26 = vpop.f32.mrf.mxu1 }
 0x579   :  { %v2373_v21 = vadd.f32 %v2372_v26, %v2173_v31  ;;  %v2377_v37 = vmax.f32 %v2371_v33, 0.0 }
 0x57a   :  { %v2374_v29 = vpop.f32.mrf.mxu1 }
 0x57b   :  { %v2378_v36 = vmax.f32 %v2373_v21, 0.0 }
 0x57c   :  { %v2375_v27 = vpop.f32.mrf.mxu1 }
 0x57d   :  { %2507 = vmatprep.mubr.f32.mxu0 %v2378_v36 }
 0x57e   :  { %2508 = vmatmul.mubr.f32.vlgmr.msra.gmra.mxu0 %v2377_v37 }
 0x5fc   :  { %v2948_v38 = vpop.f32.mrf.mxu1 }
 0x5fe   :  { %v2949_v39 = vpop.f32.mrf.mxu1 }
 0x5ff   :  { %v2950_v42 = vadd.f32 %v2949_v39, %v2948_v38 }
 0x63e   :  { %v2913_v40 = vpop.f32.mrf.mxu0 }
 0x640   :  { %v2914_v41 = vpop.f32.mrf.mxu0 }
 0x641   :  { %v2915_v43 = vadd.f32 %v2914_v41, %v2913_v40 }
 0x643   :  { %v2580_v35 = vadd.f32 %v2950_v42, %v2915_v43 }
 0x645   :  { %v2590_v44 = vadd.f32 %v2836_v34, %v2580_v35 }
 0x647   :  { %2592 = vst.msk [vmem:[%s4187_s14] sm:$0x3] %vm2591_vm4, %v2590_v44 }
 0x648   :  { %2597 = vsyncpa [#allocation3], 1 }

</bundles_post_ra>
